<compile_context>
chip_gen: v7x
topology: tpu7x:2x2x1
jax: 0.10.0
libtpu: 0.0.40
codegen_flags: <defaults>
</compile_context>

<pallas_src>
import functools

import jax
import jax.numpy as jnp
from jax.experimental import pallas as pl
from jax.experimental.pallas import tpu as pltpu


def _round_up(n, m):
    return ((n + m - 1) // m) * m


def _suggested_batch_shards():
    """2 on a 2-TensorCore chip (v7x), else 1 (v5e/v6e have a single TC)."""
    try:
        kind = jax.devices()[0].device_kind.lower()
        if "v7" in kind:
            return 2
    except Exception:
        pass
    return 1


# ----------------------------------------------------------------------------
# Kernel
# ----------------------------------------------------------------------------
def decoder_kernel(x_ref, wih_ref, whh_ref, b_ref, wfc_ref, bfc_ref, out_ref):
    """Fused Decoder forward for one batch shard, everything in VMEM.

    x_ref   : (Bt, F)       latent input rows for this shard (f32)
    wih_ref : (F,  4*Hp)    input->gates weight, per-gate lane-padded (bf16)
    whh_ref : (Hp, 4*Hp)    hidden->gates weight, per-gate lane-padded (bf16)
    b_ref   : (1,  4*Hp)    combined b_ih + b_hh, per-gate lane-padded (f32)
    wfc_ref : (Hp, Op)      Linear weight, zero rows H..Hp, zero cols O..Op (bf16)
    bfc_ref : (1,  Op)      Linear bias, zero-padded (f32)
    out_ref : (T*Bt, Op)    time-major lane-dense output slab (f32)
    """
    Bt = x_ref.shape[0]
    Hp = whh_ref.shape[0]
    T = out_ref.shape[0] // Bt

    # ---- Input projection + bias: computed exactly once (input is constant
    #      across time), f32 accumulation on the MXU.
    x_bf = x_ref[...].astype(jnp.bfloat16)
    gx = (jnp.dot(x_bf, wih_ref[...], preferred_element_type=jnp.float32)
          + b_ref[...])                                          # (Bt, 4*Hp) f32

    # Read W_hh once; reused (held resident) across the unrolled recurrence.
    whh = whh_ref[...]                                           # (Hp, 4*Hp) bf16

    def sig(v):  # logistic via a single EUP tanh (no exact divide on the VALU)
        return 0.5 * (1.0 + jnp.tanh(0.5 * v))

    h = jnp.zeros((Bt, Hp), jnp.float32)
    c = jnp.zeros((Bt, Hp), jnp.float32)
    hs = []

    # ---- Recurrence: statically unrolled (T is small); only the bf16
    #      h @ W_hh matmul is on the serial per-step critical path.  Gate
    #      slices land on 128-lane boundaries (free).
    for _ in range(T):
        gates = gx + jnp.dot(h.astype(jnp.bfloat16), whh,
                             preferred_element_type=jnp.float32)  # (Bt, 4*Hp)
        i_g = sig(gates[:, 0 * Hp:1 * Hp])
        f_g = sig(gates[:, 1 * Hp:2 * Hp])
        g_g = jnp.tanh(gates[:, 2 * Hp:3 * Hp])
        o_g = sig(gates[:, 3 * Hp:4 * Hp])
        c = f_g * c + i_g * g_g
        h = o_g * jnp.tanh(c)
        hs.append(h)

    # ---- Hidden history kept in registers; major-axis concat is pure vreg
    #      stacking (time-major).  One batched output GEMM, lane-dense store.
    h_all = jnp.concatenate(hs, axis=0).astype(jnp.bfloat16)     # (T*Bt, Hp)
    y = (jnp.dot(h_all, wfc_ref[...], preferred_element_type=jnp.float32)
         + bfc_ref[...])                                         # (T*Bt, Op) f32
    out_ref[...] = y.astype(out_ref.dtype)


# ----------------------------------------------------------------------------
# One-time parameter packing (run once at model init, not per forward call)
# ----------------------------------------------------------------------------
def pack_decoder_params(w_ih, w_hh, b_ih, b_hh, w_fc, b_fc):
    """PyTorch layout -> lane-padded, (in, out) layout, bf16 MXU operands."""
    H = w_hh.shape[1]
    F = w_ih.shape[1]
    O = w_fc.shape[0]
    Hp = _round_up(H, 128)
    Op = _round_up(O, 128)

    def pack_gates(w, in_dim, in_pad):
        blocks = []
        for k in range(4):                                     # PyTorch order i,f,g,o
            wk = jnp.transpose(w[k * H:(k + 1) * H, :])        # (in, H)
            wk = jnp.pad(wk, ((0, in_pad - in_dim), (0, Hp - H)))
            blocks.append(wk)
        return jnp.concatenate(blocks, axis=1).astype(jnp.bfloat16)   # (in_pad, 4*Hp)

    wih_p = pack_gates(w_ih, F, F)                             # (F,  4*Hp) bf16
    whh_p = pack_gates(w_hh, H, Hp)                            # (Hp, 4*Hp) bf16

    b = (b_ih + b_hh).astype(jnp.float32)
    bias_p = jnp.concatenate(
        [jnp.pad(b[k * H:(k + 1) * H], (0, Hp - H)) for k in range(4)]
    ).reshape(1, 4 * Hp)                                       # (1, 4*Hp) f32

    wfc_p = jnp.pad(jnp.transpose(w_fc),
                    ((0, Hp - H), (0, Op - O))).astype(jnp.bfloat16)   # (Hp, Op)
    bfc_p = jnp.pad(b_fc.astype(jnp.float32), (0, Op - O)).reshape(1, Op)
    return wih_p, whh_p, bias_p, wfc_p, bfc_p


# ----------------------------------------------------------------------------
# Forward wrapper
# ----------------------------------------------------------------------------
def _decoder_forward_impl(x, wih_p, whh_p, bias_p, wfc_p, bfc_p, *,
                          seq_len, output_size, num_batch_shards=1):
    B, F = x.shape
    Hp = whh_p.shape[0]
    Op = wfc_p.shape[1]
    O = output_size
    T = seq_len

    shards = max(1, int(num_batch_shards))
    Bt = _round_up(-(-B // shards), 8)       # >= 8 sublane rows per shard
    Bp = Bt * shards
    x_pad = jnp.pad(x.astype(jnp.float32), ((0, Bp - B), (0, 0)))

    def _nbytes(a):
        return int(a.size) * a.dtype.itemsize

    per_core_bytes = (Bt * F * 4 + _nbytes(wih_p) + _nbytes(whh_p)
                      + _nbytes(bias_p) + _nbytes(wfc_p) + _nbytes(bfc_p)
                      + T * Bt * Op * 4)
    vmem_limit = int(min(32 * 1024 * 1024, max(4 * 1024 * 1024, 4 * per_core_bytes)))

    out = pl.pallas_call(
        decoder_kernel,
        out_shape=jax.ShapeDtypeStruct((shards * T * Bt, Op), jnp.float32),
        grid=(shards,),
        in_specs=[
            pl.BlockSpec((Bt, F), lambda s: (s, 0)),          # x: per-shard rows
            pl.BlockSpec((F, 4 * Hp), lambda s: (0, 0)),      # W_ih (shared)
            pl.BlockSpec((Hp, 4 * Hp), lambda s: (0, 0)),     # W_hh (shared)
            pl.BlockSpec((1, 4 * Hp), lambda s: (0, 0)),      # bias (shared)
            pl.BlockSpec((Hp, Op), lambda s: (0, 0)),         # W_fc (shared)
            pl.BlockSpec((1, Op), lambda s: (0, 0)),          # b_fc (shared)
        ],
        out_specs=pl.BlockSpec((T * Bt, Op), lambda s: (s, 0)),
        compiler_params=pltpu.CompilerParams(
            dimension_semantics=("parallel",),
            vmem_limit_bytes=vmem_limit),
    )(x_pad, wih_p, whh_p, bias_p, wfc_p, bfc_p)

    # Kernel emits a lane-dense time-major slab; tiny batch-major reorder +
    # un-pad is layout plumbing in the wrapper (negligible at any size vs the
    # recurrence, and keeps all kernel stores unmasked).
    out = out.reshape(shards, T, Bt, Op)
    out = jnp.transpose(out, (0, 2, 1, 3)).reshape(Bp, T, Op)
    return out[:B, :, :O]


decoder_forward = jax.jit(
    _decoder_forward_impl,
    static_argnames=("seq_len", "output_size", "num_batch_shards"))


# ----------------------------------------------------------------------------
# Pure-JAX reference matching the PyTorch Decoder (f32)
# ----------------------------------------------------------------------------
def _reference_decoder(x, w_ih, w_hh, b_ih, b_hh, w_fc, b_fc, seq_len):
    B, F = x.shape
    H = w_hh.shape[1]
    h = jnp.zeros((B, H), jnp.float32)
    c = jnp.zeros((B, H), jnp.float32)
    hs = []
    for _ in range(seq_len):
        gates = x @ w_ih.T + b_ih + h @ w_hh.T + b_hh     # repeated input
        i = jax.nn.sigmoid(gates[:, 0 * H:1 * H])
        f = jax.nn.sigmoid(gates[:, 1 * H:2 * H])
        g = jnp.tanh(gates[:, 2 * H:3 * H])
        o = jax.nn.sigmoid(gates[:, 3 * H:4 * H])
        c = f * c + i * g
        h = o * jnp.tanh(c)
        hs.append(h)
    hseq = jnp.stack(hs, axis=1)                          # (B, T, H)
    return hseq @ w_fc.T + b_fc                           # (B, T, O)


if __name__ == "__main__":
    # Small shapes consistent with Decoder(seq_len, no_features, output_size).
    batch = 2
    seq_len = 8
    no_features = 4              # Decoder latent feature count
    hidden = 2 * no_features     # LSTM hidden size (per the module)
    output_size = 6              # reconstructed feature count

    key = jax.random.PRNGKey(0)
    kx, k1, k2, k3, k4, k5, k6 = jax.random.split(key, 7)

    bound = 1.0 / (hidden ** 0.5)
    w_ih = jax.random.uniform(k1, (4 * hidden, no_features), jnp.float32, -bound, bound)
    w_hh = jax.random.uniform(k2, (4 * hidden, hidden), jnp.float32, -bound, bound)
    b_ih = jax.random.uniform(k3, (4 * hidden,), jnp.float32, -bound, bound)
    b_hh = jax.random.uniform(k4, (4 * hidden,), jnp.float32, -bound, bound)
    w_fc = jax.random.uniform(k5, (output_size, hidden), jnp.float32, -bound, bound)
    b_fc = jax.random.uniform(k6, (output_size,), jnp.float32, -bound, bound)

    x = jax.random.normal(kx, (batch, no_features), jnp.float32)

    # Pack once (model init time), run forward.
    packed = pack_decoder_params(w_ih, w_hh, b_ih, b_hh, w_fc, b_fc)
    shards = _suggested_batch_shards()
    out = decoder_forward(x, *packed, seq_len=seq_len, output_size=output_size,
                          num_batch_shards=shards)
    out = jax.block_until_ready(out)

    ref = _reference_decoder(x, w_ih, w_hh, b_ih, b_hh, w_fc, b_fc, seq_len)
    assert out.shape == (batch, seq_len, output_size)
    # bf16 MXU operands (f32 accumulation) through an 8-step recurrence:
    # tolerance relaxed vs the pure-f32 version per the correctness review.
    err = float(jnp.max(jnp.abs(out - ref)))
    assert jnp.allclose(out, ref, atol=5e-2, rtol=5e-2), err

    print("KERNEL_OK")
</pallas_src>

<mosaic_0001>
module attributes {stable_mosaic.version = 11 : i64} {
  func.func @decoder_kernel(%arg0: i32, %arg1: memref<8x4xf32, #tpu.memory_space<vmem>>, %arg2: memref<4x512xbf16, #tpu.memory_space<vmem>>, %arg3: memref<128x512xbf16, #tpu.memory_space<vmem>>, %arg4: memref<1x512xf32, #tpu.memory_space<vmem>>, %arg5: memref<128x128xbf16, #tpu.memory_space<vmem>>, %arg6: memref<1x128xf32, #tpu.memory_space<vmem>>, %arg7: memref<64x128xf32, #tpu.memory_space<vmem>>) attributes {dimension_semantics = [#tpu.dimension_semantics<parallel>], iteration_bounds = array<i64: 1>, scalar_prefetch = 0 : i64, scratch_operands = 0 : i64, tpu.core_type = #tpu.core_type<tc>, window_params = [{transform_indices = @transform_0, window_bounds = array<i64: 8, 4>}, {pipeline_mode = #tpu.pipeline_mode<synchronous>, transform_indices = @transform_1, window_bounds = array<i64: 4, 512>}, {pipeline_mode = #tpu.pipeline_mode<synchronous>, transform_indices = @transform_2, window_bounds = array<i64: 128, 512>}, {pipeline_mode = #tpu.pipeline_mode<synchronous>, transform_indices = @transform_3, window_bounds = array<i64: 1, 512>}, {pipeline_mode = #tpu.pipeline_mode<synchronous>, transform_indices = @transform_4, window_bounds = array<i64: 128, 128>}, {pipeline_mode = #tpu.pipeline_mode<synchronous>, transform_indices = @transform_5, window_bounds = array<i64: 1, 128>}, {transform_indices = @transform_6, window_bounds = array<i64: 64, 128>}]} {
    %c0 = arith.constant 0 : index
    %c0_0 = arith.constant 0 : index
    %0 = vector.load %arg1[%c0, %c0_0] : memref<8x4xf32, #tpu.memory_space<vmem>>, vector<8x4xf32>
    %1 = arith.truncf %0 : vector<8x4xf32> to vector<8x4xbf16>
    %c0_1 = arith.constant 0 : index
    %c0_2 = arith.constant 0 : index
    %2 = vector.load %arg2[%c0_1, %c0_2] : memref<4x512xbf16, #tpu.memory_space<vmem>>, vector<4x512xbf16>
    %cst = arith.constant dense<0.000000e+00> : vector<8x512xf32>
    %3 = tpu.matmul %1, %2, %cst {dimension_numbers = #tpu.dot_dimension_numbers<[1], [0], [0], [1], [0, 0, 1, 1], [], []>} : vector<8x4xbf16>, vector<4x512xbf16>, vector<8x512xf32> -> vector<8x512xf32>
    %c0_3 = arith.constant 0 : index
    %c0_4 = arith.constant 0 : index
    %4 = vector.load %arg4[%c0_3, %c0_4] : memref<1x512xf32, #tpu.memory_space<vmem>>, vector<1x512xf32>
    %5 = vector.broadcast %4 : vector<1x512xf32> to vector<8x512xf32>
    %6 = arith.addf %3, %5 : vector<8x512xf32>
    %c0_5 = arith.constant 0 : index
    %c0_6 = arith.constant 0 : index
    %7 = vector.load %arg3[%c0_5, %c0_6] : memref<128x512xbf16, #tpu.memory_space<vmem>>, vector<128x512xbf16>
    %cst_7 = arith.constant 0.000000e+00 : f32
    %8 = vector.broadcast %cst_7 : f32 to vector<8x128xf32>
    %cst_8 = arith.constant 0.000000e+00 : f32
    %9 = vector.broadcast %cst_8 : f32 to vector<8x128xf32>
    %10 = arith.truncf %8 : vector<8x128xf32> to vector<8x128xbf16>
    %cst_9 = arith.constant dense<0.000000e+00> : vector<8x512xf32>
    %11 = tpu.matmul %10, %7, %cst_9 {dimension_numbers = #tpu.dot_dimension_numbers<[1], [0], [0], [1], [0, 0, 1, 1], [], []>} : vector<8x128xbf16>, vector<128x512xbf16>, vector<8x512xf32> -> vector<8x512xf32>
    %12 = arith.addf %6, %11 : vector<8x512xf32>
    %13 = vector.extract_strided_slice %12 {offsets = [0, 0], sizes = [8, 128], strides = [1, 1]} : vector<8x512xf32> to vector<8x128xf32>
    %cst_10 = arith.constant 5.000000e-01 : f32
    %14 = vector.broadcast %cst_10 : f32 to vector<8x128xf32>
    %15 = arith.mulf %14, %13 : vector<8x128xf32>
    %16 = math.tanh %15 : vector<8x128xf32>
    %cst_11 = arith.constant 1.000000e+00 : f32
    %17 = vector.broadcast %cst_11 : f32 to vector<8x128xf32>
    %18 = arith.addf %17, %16 : vector<8x128xf32>
    %cst_12 = arith.constant 5.000000e-01 : f32
    %19 = vector.broadcast %cst_12 : f32 to vector<8x128xf32>
    %20 = arith.mulf %19, %18 : vector<8x128xf32>
    %21 = vector.extract_strided_slice %12 {offsets = [0, 128], sizes = [8, 128], strides = [1, 1]} : vector<8x512xf32> to vector<8x128xf32>
    %cst_13 = arith.constant 5.000000e-01 : f32
    %22 = vector.broadcast %cst_13 : f32 to vector<8x128xf32>
    %23 = arith.mulf %22, %21 : vector<8x128xf32>
    %24 = math.tanh %23 : vector<8x128xf32>
    %cst_14 = arith.constant 1.000000e+00 : f32
    %25 = vector.broadcast %cst_14 : f32 to vector<8x128xf32>
    %26 = arith.addf %25, %24 : vector<8x128xf32>
    %cst_15 = arith.constant 5.000000e-01 : f32
    %27 = vector.broadcast %cst_15 : f32 to vector<8x128xf32>
    %28 = arith.mulf %27, %26 : vector<8x128xf32>
    %29 = vector.extract_strided_slice %12 {offsets = [0, 256], sizes = [8, 128], strides = [1, 1]} : vector<8x512xf32> to vector<8x128xf32>
    %30 = math.tanh %29 : vector<8x128xf32>
    %31 = vector.extract_strided_slice %12 {offsets = [0, 384], sizes = [8, 128], strides = [1, 1]} : vector<8x512xf32> to vector<8x128xf32>
    %cst_16 = arith.constant 5.000000e-01 : f32
    %32 = vector.broadcast %cst_16 : f32 to vector<8x128xf32>
    %33 = arith.mulf %32, %31 : vector<8x128xf32>
    %34 = math.tanh %33 : vector<8x128xf32>
    %cst_17 = arith.constant 1.000000e+00 : f32
    %35 = vector.broadcast %cst_17 : f32 to vector<8x128xf32>
    %36 = arith.addf %35, %34 : vector<8x128xf32>
    %cst_18 = arith.constant 5.000000e-01 : f32
    %37 = vector.broadcast %cst_18 : f32 to vector<8x128xf32>
    %38 = arith.mulf %37, %36 : vector<8x128xf32>
    %39 = arith.mulf %28, %9 : vector<8x128xf32>
    %40 = arith.mulf %20, %30 : vector<8x128xf32>
    %41 = arith.addf %39, %40 : vector<8x128xf32>
    %42 = math.tanh %41 : vector<8x128xf32>
    %43 = arith.mulf %38, %42 : vector<8x128xf32>
    %44 = arith.truncf %43 : vector<8x128xf32> to vector<8x128xbf16>
    %cst_19 = arith.constant dense<0.000000e+00> : vector<8x512xf32>
    %45 = tpu.matmul %44, %7, %cst_19 {dimension_numbers = #tpu.dot_dimension_numbers<[1], [0], [0], [1], [0, 0, 1, 1], [], []>} : vector<8x128xbf16>, vector<128x512xbf16>, vector<8x512xf32> -> vector<8x512xf32>
    %46 = arith.addf %6, %45 : vector<8x512xf32>
    %47 = vector.extract_strided_slice %46 {offsets = [0, 0], sizes = [8, 128], strides = [1, 1]} : vector<8x512xf32> to vector<8x128xf32>
    %cst_20 = arith.constant 5.000000e-01 : f32
    %48 = vector.broadcast %cst_20 : f32 to vector<8x128xf32>
    %49 = arith.mulf %48, %47 : vector<8x128xf32>
    %50 = math.tanh %49 : vector<8x128xf32>
    %cst_21 = arith.constant 1.000000e+00 : f32
    %51 = vector.broadcast %cst_21 : f32 to vector<8x128xf32>
    %52 = arith.addf %51, %50 : vector<8x128xf32>
    %cst_22 = arith.constant 5.000000e-01 : f32
    %53 = vector.broadcast %cst_22 : f32 to vector<8x128xf32>
    %54 = arith.mulf %53, %52 : vector<8x128xf32>
    %55 = vector.extract_strided_slice %46 {offsets = [0, 128], sizes = [8, 128], strides = [1, 1]} : vector<8x512xf32> to vector<8x128xf32>
    %cst_23 = arith.constant 5.000000e-01 : f32
    %56 = vector.broadcast %cst_23 : f32 to vector<8x128xf32>
    %57 = arith.mulf %56, %55 : vector<8x128xf32>
    %58 = math.tanh %57 : vector<8x128xf32>
    %cst_24 = arith.constant 1.000000e+00 : f32
    %59 = vector.broadcast %cst_24 : f32 to vector<8x128xf32>
    %60 = arith.addf %59, %58 : vector<8x128xf32>
    %cst_25 = arith.constant 5.000000e-01 : f32
    %61 = vector.broadcast %cst_25 : f32 to vector<8x128xf32>
    %62 = arith.mulf %61, %60 : vector<8x128xf32>
    %63 = vector.extract_strided_slice %46 {offsets = [0, 256], sizes = [8, 128], strides = [1, 1]} : vector<8x512xf32> to vector<8x128xf32>
    %64 = math.tanh %63 : vector<8x128xf32>
    %65 = vector.extract_strided_slice %46 {offsets = [0, 384], sizes = [8, 128], strides = [1, 1]} : vector<8x512xf32> to vector<8x128xf32>
    %cst_26 = arith.constant 5.000000e-01 : f32
    %66 = vector.broadcast %cst_26 : f32 to vector<8x128xf32>
    %67 = arith.mulf %66, %65 : vector<8x128xf32>
    %68 = math.tanh %67 : vector<8x128xf32>
    %cst_27 = arith.constant 1.000000e+00 : f32
    %69 = vector.broadcast %cst_27 : f32 to vector<8x128xf32>
    %70 = arith.addf %69, %68 : vector<8x128xf32>
    %cst_28 = arith.constant 5.000000e-01 : f32
    %71 = vector.broadcast %cst_28 : f32 to vector<8x128xf32>
    %72 = arith.mulf %71, %70 : vector<8x128xf32>
    %73 = arith.mulf %62, %41 : vector<8x128xf32>
    %74 = arith.mulf %54, %64 : vector<8x128xf32>
    %75 = arith.addf %73, %74 : vector<8x128xf32>
    %76 = math.tanh %75 : vector<8x128xf32>
    %77 = arith.mulf %72, %76 : vector<8x128xf32>
    %78 = arith.truncf %77 : vector<8x128xf32> to vector<8x128xbf16>
    %cst_29 = arith.constant dense<0.000000e+00> : vector<8x512xf32>
    %79 = tpu.matmul %78, %7, %cst_29 {dimension_numbers = #tpu.dot_dimension_numbers<[1], [0], [0], [1], [0, 0, 1, 1], [], []>} : vector<8x128xbf16>, vector<128x512xbf16>, vector<8x512xf32> -> vector<8x512xf32>
    %80 = arith.addf %6, %79 : vector<8x512xf32>
    %81 = vector.extract_strided_slice %80 {offsets = [0, 0], sizes = [8, 128], strides = [1, 1]} : vector<8x512xf32> to vector<8x128xf32>
    %cst_30 = arith.constant 5.000000e-01 : f32
    %82 = vector.broadcast %cst_30 : f32 to vector<8x128xf32>
    %83 = arith.mulf %82, %81 : vector<8x128xf32>
    %84 = math.tanh %83 : vector<8x128xf32>
    %cst_31 = arith.constant 1.000000e+00 : f32
    %85 = vector.broadcast %cst_31 : f32 to vector<8x128xf32>
    %86 = arith.addf %85, %84 : vector<8x128xf32>
    %cst_32 = arith.constant 5.000000e-01 : f32
    %87 = vector.broadcast %cst_32 : f32 to vector<8x128xf32>
    %88 = arith.mulf %87, %86 : vector<8x128xf32>
    %89 = vector.extract_strided_slice %80 {offsets = [0, 128], sizes = [8, 128], strides = [1, 1]} : vector<8x512xf32> to vector<8x128xf32>
    %cst_33 = arith.constant 5.000000e-01 : f32
    %90 = vector.broadcast %cst_33 : f32 to vector<8x128xf32>
    %91 = arith.mulf %90, %89 : vector<8x128xf32>
    %92 = math.tanh %91 : vector<8x128xf32>
    %cst_34 = arith.constant 1.000000e+00 : f32
    %93 = vector.broadcast %cst_34 : f32 to vector<8x128xf32>
    %94 = arith.addf %93, %92 : vector<8x128xf32>
    %cst_35 = arith.constant 5.000000e-01 : f32
    %95 = vector.broadcast %cst_35 : f32 to vector<8x128xf32>
    %96 = arith.mulf %95, %94 : vector<8x128xf32>
    %97 = vector.extract_strided_slice %80 {offsets = [0, 256], sizes = [8, 128], strides = [1, 1]} : vector<8x512xf32> to vector<8x128xf32>
    %98 = math.tanh %97 : vector<8x128xf32>
    %99 = vector.extract_strided_slice %80 {offsets = [0, 384], sizes = [8, 128], strides = [1, 1]} : vector<8x512xf32> to vector<8x128xf32>
    %cst_36 = arith.constant 5.000000e-01 : f32
    %100 = vector.broadcast %cst_36 : f32 to vector<8x128xf32>
    %101 = arith.mulf %100, %99 : vector<8x128xf32>
    %102 = math.tanh %101 : vector<8x128xf32>
    %cst_37 = arith.constant 1.000000e+00 : f32
    %103 = vector.broadcast %cst_37 : f32 to vector<8x128xf32>
    %104 = arith.addf %103, %102 : vector<8x128xf32>
    %cst_38 = arith.constant 5.000000e-01 : f32
    %105 = vector.broadcast %cst_38 : f32 to vector<8x128xf32>
    %106 = arith.mulf %105, %104 : vector<8x128xf32>
    %107 = arith.mulf %96, %75 : vector<8x128xf32>
    %108 = arith.mulf %88, %98 : vector<8x128xf32>
    %109 = arith.addf %107, %108 : vector<8x128xf32>
    %110 = math.tanh %109 : vector<8x128xf32>
    %111 = arith.mulf %106, %110 : vector<8x128xf32>
    %112 = arith.truncf %111 : vector<8x128xf32> to vector<8x128xbf16>
    %cst_39 = arith.constant dense<0.000000e+00> : vector<8x512xf32>
    %113 = tpu.matmul %112, %7, %cst_39 {dimension_numbers = #tpu.dot_dimension_numbers<[1], [0], [0], [1], [0, 0, 1, 1], [], []>} : vector<8x128xbf16>, vector<128x512xbf16>, vector<8x512xf32> -> vector<8x512xf32>
    %114 = arith.addf %6, %113 : vector<8x512xf32>
    %115 = vector.extract_strided_slice %114 {offsets = [0, 0], sizes = [8, 128], strides = [1, 1]} : vector<8x512xf32> to vector<8x128xf32>
    %cst_40 = arith.constant 5.000000e-01 : f32
    %116 = vector.broadcast %cst_40 : f32 to vector<8x128xf32>
    %117 = arith.mulf %116, %115 : vector<8x128xf32>
    %118 = math.tanh %117 : vector<8x128xf32>
    %cst_41 = arith.constant 1.000000e+00 : f32
    %119 = vector.broadcast %cst_41 : f32 to vector<8x128xf32>
    %120 = arith.addf %119, %118 : vector<8x128xf32>
    %cst_42 = arith.constant 5.000000e-01 : f32
    %121 = vector.broadcast %cst_42 : f32 to vector<8x128xf32>
    %122 = arith.mulf %121, %120 : vector<8x128xf32>
    %123 = vector.extract_strided_slice %114 {offsets = [0, 128], sizes = [8, 128], strides = [1, 1]} : vector<8x512xf32> to vector<8x128xf32>
    %cst_43 = arith.constant 5.000000e-01 : f32
    %124 = vector.broadcast %cst_43 : f32 to vector<8x128xf32>
    %125 = arith.mulf %124, %123 : vector<8x128xf32>
    %126 = math.tanh %125 : vector<8x128xf32>
    %cst_44 = arith.constant 1.000000e+00 : f32
    %127 = vector.broadcast %cst_44 : f32 to vector<8x128xf32>
    %128 = arith.addf %127, %126 : vector<8x128xf32>
    %cst_45 = arith.constant 5.000000e-01 : f32
    %129 = vector.broadcast %cst_45 : f32 to vector<8x128xf32>
    %130 = arith.mulf %129, %128 : vector<8x128xf32>
    %131 = vector.extract_strided_slice %114 {offsets = [0, 256], sizes = [8, 128], strides = [1, 1]} : vector<8x512xf32> to vector<8x128xf32>
    %132 = math.tanh %131 : vector<8x128xf32>
    %133 = vector.extract_strided_slice %114 {offsets = [0, 384], sizes = [8, 128], strides = [1, 1]} : vector<8x512xf32> to vector<8x128xf32>
    %cst_46 = arith.constant 5.000000e-01 : f32
    %134 = vector.broadcast %cst_46 : f32 to vector<8x128xf32>
    %135 = arith.mulf %134, %133 : vector<8x128xf32>
    %136 = math.tanh %135 : vector<8x128xf32>
    %cst_47 = arith.constant 1.000000e+00 : f32
    %137 = vector.broadcast %cst_47 : f32 to vector<8x128xf32>
    %138 = arith.addf %137, %136 : vector<8x128xf32>
    %cst_48 = arith.constant 5.000000e-01 : f32
    %139 = vector.broadcast %cst_48 : f32 to vector<8x128xf32>
    %140 = arith.mulf %139, %138 : vector<8x128xf32>
    %141 = arith.mulf %130, %109 : vector<8x128xf32>
    %142 = arith.mulf %122, %132 : vector<8x128xf32>
    %143 = arith.addf %141, %142 : vector<8x128xf32>
    %144 = math.tanh %143 : vector<8x128xf32>
    %145 = arith.mulf %140, %144 : vector<8x128xf32>
    %146 = arith.truncf %145 : vector<8x128xf32> to vector<8x128xbf16>
    %cst_49 = arith.constant dense<0.000000e+00> : vector<8x512xf32>
    %147 = tpu.matmul %146, %7, %cst_49 {dimension_numbers = #tpu.dot_dimension_numbers<[1], [0], [0], [1], [0, 0, 1, 1], [], []>} : vector<8x128xbf16>, vector<128x512xbf16>, vector<8x512xf32> -> vector<8x512xf32>
    %148 = arith.addf %6, %147 : vector<8x512xf32>
    %149 = vector.extract_strided_slice %148 {offsets = [0, 0], sizes = [8, 128], strides = [1, 1]} : vector<8x512xf32> to vector<8x128xf32>
    %cst_50 = arith.constant 5.000000e-01 : f32
    %150 = vector.broadcast %cst_50 : f32 to vector<8x128xf32>
    %151 = arith.mulf %150, %149 : vector<8x128xf32>
    %152 = math.tanh %151 : vector<8x128xf32>
    %cst_51 = arith.constant 1.000000e+00 : f32
    %153 = vector.broadcast %cst_51 : f32 to vector<8x128xf32>
    %154 = arith.addf %153, %152 : vector<8x128xf32>
    %cst_52 = arith.constant 5.000000e-01 : f32
    %155 = vector.broadcast %cst_52 : f32 to vector<8x128xf32>
    %156 = arith.mulf %155, %154 : vector<8x128xf32>
    %157 = vector.extract_strided_slice %148 {offsets = [0, 128], sizes = [8, 128], strides = [1, 1]} : vector<8x512xf32> to vector<8x128xf32>
    %cst_53 = arith.constant 5.000000e-01 : f32
    %158 = vector.broadcast %cst_53 : f32 to vector<8x128xf32>
    %159 = arith.mulf %158, %157 : vector<8x128xf32>
    %160 = math.tanh %159 : vector<8x128xf32>
    %cst_54 = arith.constant 1.000000e+00 : f32
    %161 = vector.broadcast %cst_54 : f32 to vector<8x128xf32>
    %162 = arith.addf %161, %160 : vector<8x128xf32>
    %cst_55 = arith.constant 5.000000e-01 : f32
    %163 = vector.broadcast %cst_55 : f32 to vector<8x128xf32>
    %164 = arith.mulf %163, %162 : vector<8x128xf32>
    %165 = vector.extract_strided_slice %148 {offsets = [0, 256], sizes = [8, 128], strides = [1, 1]} : vector<8x512xf32> to vector<8x128xf32>
    %166 = math.tanh %165 : vector<8x128xf32>
    %167 = vector.extract_strided_slice %148 {offsets = [0, 384], sizes = [8, 128], strides = [1, 1]} : vector<8x512xf32> to vector<8x128xf32>
    %cst_56 = arith.constant 5.000000e-01 : f32
    %168 = vector.broadcast %cst_56 : f32 to vector<8x128xf32>
    %169 = arith.mulf %168, %167 : vector<8x128xf32>
    %170 = math.tanh %169 : vector<8x128xf32>
    %cst_57 = arith.constant 1.000000e+00 : f32
    %171 = vector.broadcast %cst_57 : f32 to vector<8x128xf32>
    %172 = arith.addf %171, %170 : vector<8x128xf32>
    %cst_58 = arith.constant 5.000000e-01 : f32
    %173 = vector.broadcast %cst_58 : f32 to vector<8x128xf32>
    %174 = arith.mulf %173, %172 : vector<8x128xf32>
    %175 = arith.mulf %164, %143 : vector<8x128xf32>
    %176 = arith.mulf %156, %166 : vector<8x128xf32>
    %177 = arith.addf %175, %176 : vector<8x128xf32>
    %178 = math.tanh %177 : vector<8x128xf32>
    %179 = arith.mulf %174, %178 : vector<8x128xf32>
    %180 = arith.truncf %179 : vector<8x128xf32> to vector<8x128xbf16>
    %cst_59 = arith.constant dense<0.000000e+00> : vector<8x512xf32>
    %181 = tpu.matmul %180, %7, %cst_59 {dimension_numbers = #tpu.dot_dimension_numbers<[1], [0], [0], [1], [0, 0, 1, 1], [], []>} : vector<8x128xbf16>, vector<128x512xbf16>, vector<8x512xf32> -> vector<8x512xf32>
    %182 = arith.addf %6, %181 : vector<8x512xf32>
    %183 = vector.extract_strided_slice %182 {offsets = [0, 0], sizes = [8, 128], strides = [1, 1]} : vector<8x512xf32> to vector<8x128xf32>
    %cst_60 = arith.constant 5.000000e-01 : f32
    %184 = vector.broadcast %cst_60 : f32 to vector<8x128xf32>
    %185 = arith.mulf %184, %183 : vector<8x128xf32>
    %186 = math.tanh %185 : vector<8x128xf32>
    %cst_61 = arith.constant 1.000000e+00 : f32
    %187 = vector.broadcast %cst_61 : f32 to vector<8x128xf32>
    %188 = arith.addf %187, %186 : vector<8x128xf32>
    %cst_62 = arith.constant 5.000000e-01 : f32
    %189 = vector.broadcast %cst_62 : f32 to vector<8x128xf32>
    %190 = arith.mulf %189, %188 : vector<8x128xf32>
    %191 = vector.extract_strided_slice %182 {offsets = [0, 128], sizes = [8, 128], strides = [1, 1]} : vector<8x512xf32> to vector<8x128xf32>
    %cst_63 = arith.constant 5.000000e-01 : f32
    %192 = vector.broadcast %cst_63 : f32 to vector<8x128xf32>
    %193 = arith.mulf %192, %191 : vector<8x128xf32>
    %194 = math.tanh %193 : vector<8x128xf32>
    %cst_64 = arith.constant 1.000000e+00 : f32
    %195 = vector.broadcast %cst_64 : f32 to vector<8x128xf32>
    %196 = arith.addf %195, %194 : vector<8x128xf32>
    %cst_65 = arith.constant 5.000000e-01 : f32
    %197 = vector.broadcast %cst_65 : f32 to vector<8x128xf32>
    %198 = arith.mulf %197, %196 : vector<8x128xf32>
    %199 = vector.extract_strided_slice %182 {offsets = [0, 256], sizes = [8, 128], strides = [1, 1]} : vector<8x512xf32> to vector<8x128xf32>
    %200 = math.tanh %199 : vector<8x128xf32>
    %201 = vector.extract_strided_slice %182 {offsets = [0, 384], sizes = [8, 128], strides = [1, 1]} : vector<8x512xf32> to vector<8x128xf32>
    %cst_66 = arith.constant 5.000000e-01 : f32
    %202 = vector.broadcast %cst_66 : f32 to vector<8x128xf32>
    %203 = arith.mulf %202, %201 : vector<8x128xf32>
    %204 = math.tanh %203 : vector<8x128xf32>
    %cst_67 = arith.constant 1.000000e+00 : f32
    %205 = vector.broadcast %cst_67 : f32 to vector<8x128xf32>
    %206 = arith.addf %205, %204 : vector<8x128xf32>
    %cst_68 = arith.constant 5.000000e-01 : f32
    %207 = vector.broadcast %cst_68 : f32 to vector<8x128xf32>
    %208 = arith.mulf %207, %206 : vector<8x128xf32>
    %209 = arith.mulf %198, %177 : vector<8x128xf32>
    %210 = arith.mulf %190, %200 : vector<8x128xf32>
    %211 = arith.addf %209, %210 : vector<8x128xf32>
    %212 = math.tanh %211 : vector<8x128xf32>
    %213 = arith.mulf %208, %212 : vector<8x128xf32>
    %214 = arith.truncf %213 : vector<8x128xf32> to vector<8x128xbf16>
    %cst_69 = arith.constant dense<0.000000e+00> : vector<8x512xf32>
    %215 = tpu.matmul %214, %7, %cst_69 {dimension_numbers = #tpu.dot_dimension_numbers<[1], [0], [0], [1], [0, 0, 1, 1], [], []>} : vector<8x128xbf16>, vector<128x512xbf16>, vector<8x512xf32> -> vector<8x512xf32>
    %216 = arith.addf %6, %215 : vector<8x512xf32>
    %217 = vector.extract_strided_slice %216 {offsets = [0, 0], sizes = [8, 128], strides = [1, 1]} : vector<8x512xf32> to vector<8x128xf32>
    %cst_70 = arith.constant 5.000000e-01 : f32
    %218 = vector.broadcast %cst_70 : f32 to vector<8x128xf32>
    %219 = arith.mulf %218, %217 : vector<8x128xf32>
    %220 = math.tanh %219 : vector<8x128xf32>
    %cst_71 = arith.constant 1.000000e+00 : f32
    %221 = vector.broadcast %cst_71 : f32 to vector<8x128xf32>
    %222 = arith.addf %221, %220 : vector<8x128xf32>
    %cst_72 = arith.constant 5.000000e-01 : f32
    %223 = vector.broadcast %cst_72 : f32 to vector<8x128xf32>
    %224 = arith.mulf %223, %222 : vector<8x128xf32>
    %225 = vector.extract_strided_slice %216 {offsets = [0, 128], sizes = [8, 128], strides = [1, 1]} : vector<8x512xf32> to vector<8x128xf32>
    %cst_73 = arith.constant 5.000000e-01 : f32
    %226 = vector.broadcast %cst_73 : f32 to vector<8x128xf32>
    %227 = arith.mulf %226, %225 : vector<8x128xf32>
    %228 = math.tanh %227 : vector<8x128xf32>
    %cst_74 = arith.constant 1.000000e+00 : f32
    %229 = vector.broadcast %cst_74 : f32 to vector<8x128xf32>
    %230 = arith.addf %229, %228 : vector<8x128xf32>
    %cst_75 = arith.constant 5.000000e-01 : f32
    %231 = vector.broadcast %cst_75 : f32 to vector<8x128xf32>
    %232 = arith.mulf %231, %230 : vector<8x128xf32>
    %233 = vector.extract_strided_slice %216 {offsets = [0, 256], sizes = [8, 128], strides = [1, 1]} : vector<8x512xf32> to vector<8x128xf32>
    %234 = math.tanh %233 : vector<8x128xf32>
    %235 = vector.extract_strided_slice %216 {offsets = [0, 384], sizes = [8, 128], strides = [1, 1]} : vector<8x512xf32> to vector<8x128xf32>
    %cst_76 = arith.constant 5.000000e-01 : f32
    %236 = vector.broadcast %cst_76 : f32 to vector<8x128xf32>
    %237 = arith.mulf %236, %235 : vector<8x128xf32>
    %238 = math.tanh %237 : vector<8x128xf32>
    %cst_77 = arith.constant 1.000000e+00 : f32
    %239 = vector.broadcast %cst_77 : f32 to vector<8x128xf32>
    %240 = arith.addf %239, %238 : vector<8x128xf32>
    %cst_78 = arith.constant 5.000000e-01 : f32
    %241 = vector.broadcast %cst_78 : f32 to vector<8x128xf32>
    %242 = arith.mulf %241, %240 : vector<8x128xf32>
    %243 = arith.mulf %232, %211 : vector<8x128xf32>
    %244 = arith.mulf %224, %234 : vector<8x128xf32>
    %245 = arith.addf %243, %244 : vector<8x128xf32>
    %246 = math.tanh %245 : vector<8x128xf32>
    %247 = arith.mulf %242, %246 : vector<8x128xf32>
    %248 = arith.truncf %247 : vector<8x128xf32> to vector<8x128xbf16>
    %cst_79 = arith.constant dense<0.000000e+00> : vector<8x512xf32>
    %249 = tpu.matmul %248, %7, %cst_79 {dimension_numbers = #tpu.dot_dimension_numbers<[1], [0], [0], [1], [0, 0, 1, 1], [], []>} : vector<8x128xbf16>, vector<128x512xbf16>, vector<8x512xf32> -> vector<8x512xf32>
    %250 = arith.addf %6, %249 : vector<8x512xf32>
    %251 = vector.extract_strided_slice %250 {offsets = [0, 0], sizes = [8, 128], strides = [1, 1]} : vector<8x512xf32> to vector<8x128xf32>
    %cst_80 = arith.constant 5.000000e-01 : f32
    %252 = vector.broadcast %cst_80 : f32 to vector<8x128xf32>
    %253 = arith.mulf %252, %251 : vector<8x128xf32>
    %254 = math.tanh %253 : vector<8x128xf32>
    %cst_81 = arith.constant 1.000000e+00 : f32
    %255 = vector.broadcast %cst_81 : f32 to vector<8x128xf32>
    %256 = arith.addf %255, %254 : vector<8x128xf32>
    %cst_82 = arith.constant 5.000000e-01 : f32
    %257 = vector.broadcast %cst_82 : f32 to vector<8x128xf32>
    %258 = arith.mulf %257, %256 : vector<8x128xf32>
    %259 = vector.extract_strided_slice %250 {offsets = [0, 128], sizes = [8, 128], strides = [1, 1]} : vector<8x512xf32> to vector<8x128xf32>
    %cst_83 = arith.constant 5.000000e-01 : f32
    %260 = vector.broadcast %cst_83 : f32 to vector<8x128xf32>
    %261 = arith.mulf %260, %259 : vector<8x128xf32>
    %262 = math.tanh %261 : vector<8x128xf32>
    %cst_84 = arith.constant 1.000000e+00 : f32
    %263 = vector.broadcast %cst_84 : f32 to vector<8x128xf32>
    %264 = arith.addf %263, %262 : vector<8x128xf32>
    %cst_85 = arith.constant 5.000000e-01 : f32
    %265 = vector.broadcast %cst_85 : f32 to vector<8x128xf32>
    %266 = arith.mulf %265, %264 : vector<8x128xf32>
    %267 = vector.extract_strided_slice %250 {offsets = [0, 256], sizes = [8, 128], strides = [1, 1]} : vector<8x512xf32> to vector<8x128xf32>
    %268 = math.tanh %267 : vector<8x128xf32>
    %269 = vector.extract_strided_slice %250 {offsets = [0, 384], sizes = [8, 128], strides = [1, 1]} : vector<8x512xf32> to vector<8x128xf32>
    %cst_86 = arith.constant 5.000000e-01 : f32
    %270 = vector.broadcast %cst_86 : f32 to vector<8x128xf32>
    %271 = arith.mulf %270, %269 : vector<8x128xf32>
    %272 = math.tanh %271 : vector<8x128xf32>
    %cst_87 = arith.constant 1.000000e+00 : f32
    %273 = vector.broadcast %cst_87 : f32 to vector<8x128xf32>
    %274 = arith.addf %273, %272 : vector<8x128xf32>
    %cst_88 = arith.constant 5.000000e-01 : f32
    %275 = vector.broadcast %cst_88 : f32 to vector<8x128xf32>
    %276 = arith.mulf %275, %274 : vector<8x128xf32>
    %277 = arith.mulf %266, %245 : vector<8x128xf32>
    %278 = arith.mulf %258, %268 : vector<8x128xf32>
    %279 = arith.addf %277, %278 : vector<8x128xf32>
    %280 = math.tanh %279 : vector<8x128xf32>
    %281 = arith.mulf %276, %280 : vector<8x128xf32>
    %282 = tpu.concatenate %43, %77, %111, %145, %179, %213, %247, %281 in 0 : vector<8x128xf32>, vector<8x128xf32>, vector<8x128xf32>, vector<8x128xf32>, vector<8x128xf32>, vector<8x128xf32>, vector<8x128xf32>, vector<8x128xf32> -> vector<64x128xf32>
    %283 = arith.truncf %282 : vector<64x128xf32> to vector<64x128xbf16>
    %c0_89 = arith.constant 0 : index
    %c0_90 = arith.constant 0 : index
    %284 = vector.load %arg5[%c0_89, %c0_90] : memref<128x128xbf16, #tpu.memory_space<vmem>>, vector<128x128xbf16>
    %cst_91 = arith.constant dense<0.000000e+00> : vector<64x128xf32>
    %285 = tpu.matmul %283, %284, %cst_91 {dimension_numbers = #tpu.dot_dimension_numbers<[1], [0], [0], [1], [0, 0, 1, 1], [], []>} : vector<64x128xbf16>, vector<128x128xbf16>, vector<64x128xf32> -> vector<64x128xf32>
    %c0_92 = arith.constant 0 : index
    %c0_93 = arith.constant 0 : index
    %286 = vector.load %arg6[%c0_92, %c0_93] : memref<1x128xf32, #tpu.memory_space<vmem>>, vector<1x128xf32>
    %287 = vector.broadcast %286 : vector<1x128xf32> to vector<64x128xf32>
    %288 = arith.addf %285, %287 : vector<64x128xf32>
    %c0_94 = arith.constant 0 : index
    %c0_95 = arith.constant 0 : index
    %289 = vector.load %arg7[%c0_94, %c0_95] : memref<64x128xf32, #tpu.memory_space<vmem>>, vector<64x128xf32>
    tpu.vector_store %arg7[%c0_94, %c0_95], %288 {strides = array<i32>} : memref<64x128xf32, #tpu.memory_space<vmem>>, vector<64x128xf32>,
    return
  }
  func.func @transform_0(%arg0: i32) -> (i32, i32) {
    %c0_i32 = arith.constant 0 : i32
    %c0_i32_0 = arith.constant 0 : i32
    return %arg0, %c0_i32 : i32, i32
  }
  func.func @transform_1(%arg0: i32) -> (i32, i32) {
    %c0_i32 = arith.constant 0 : i32
    %c0_i32_0 = arith.constant 0 : i32
    %c0_i32_1 = arith.constant 0 : i32
    return %c0_i32, %c0_i32_0 : i32, i32
  }
  func.func @transform_2(%arg0: i32) -> (i32, i32) {
    %c0_i32 = arith.constant 0 : i32
    %c0_i32_0 = arith.constant 0 : i32
    %c0_i32_1 = arith.constant 0 : i32
    return %c0_i32, %c0_i32_0 : i32, i32
  }
  func.func @transform_3(%arg0: i32) -> (i32, i32) {
    %c0_i32 = arith.constant 0 : i32
    %c0_i32_0 = arith.constant 0 : i32
    %c0_i32_1 = arith.constant 0 : i32
    return %c0_i32, %c0_i32_0 : i32, i32
  }
  func.func @transform_4(%arg0: i32) -> (i32, i32) {
    %c0_i32 = arith.constant 0 : i32
    %c0_i32_0 = arith.constant 0 : i32
    %c0_i32_1 = arith.constant 0 : i32
    return %c0_i32, %c0_i32_0 : i32, i32
  }
  func.func @transform_5(%arg0: i32) -> (i32, i32) {
    %c0_i32 = arith.constant 0 : i32
    %c0_i32_0 = arith.constant 0 : i32
    %c0_i32_1 = arith.constant 0 : i32
    return %c0_i32, %c0_i32_0 : i32, i32
  }
  func.func @transform_6(%arg0: i32) -> (i32, i32) {
    %c0_i32 = arith.constant 0 : i32
    %c0_i32_0 = arith.constant 0 : i32
    return %arg0, %c0_i32 : i32, i32
  }
}

</mosaic_0001>

<bundles_post_ra>
// kernel: _decoder_forward_impl.1
= control target key start
LH: loop header
LB: loop body
LE: loop exit
PB: predicated region body
PF: predicated region fallthrough
CT: control target
= control target key end

     0   :  { %11 = vsyncpa [#allocation3], 0  ;;  %s2224_s0 = inlined_call_operand.vmem [shape: f32[8,4], index: 0, kind: input, shape index: {}]   ;;  %s2225_s1 = inlined_call_operand.vmem [shape: bf16[4,512], index: 1, kind: input, shape index: {}]   ;;  %s2226_s2 = inlined_call_operand.hbm [shape: bf16[128,512], index: 2, kind: input, shape index: {}]   ;;  %s2227_s3 = inlined_call_operand.vmem [shape: f32[1,512], index: 3, kind: input, shape index: {}]   ;;  %s2228_s4 = inlined_call_operand.hbm [shape: bf16[128,128], index: 4, kind: input, shape index: {}]   ;;  %s2229_s5 = inlined_call_operand.vmem [shape: f32[1,128], index: 5, kind: input, shape index: {}]   ;;  %s2230_s6 = inlined_call_operand.vmem [shape: f32[64,128], index: 6, kind: output, shape index: {}]  }
   0x1   :  { %12 = vsyncpa [#allocation5], 0  ;;  %s1669_s21 = smov [#allocation2]   ;;  %s1621_s25 = scalar_lea.hbm %s2226_s2, 4096 }
   0x2   :  { %s22_s22 = sshll.u32 %s1669_s21, 4  ;;  %p1622_p0 = scmp.ne.s32.totalorder %s2226_s2, %s1621_s25  ;;  %s23_s22 = int_to_ptr.vmem [resolvable:$true] %s22_s22 }
   0x3   :  { %p1625_p1 = scmp.lt.u32.totalorder %s1621_s25, %s2226_s2 }
   0x5   :  { %p1627_p2 = pnand %p1625_p1, %p1622_p0 }
   0x7   :  { %1630 = shalt.err (!%p1627_p2)
}
   0x8   :  { %s1631_s30 = scalar_lea.vmem %s23_s22, 4096  ;;  %p1636_p4 = scmp.lt.s32.totalorder %s23_s22, %s23_s22 }
   0x9   :  { %p1632_p3 = scmp.ne.s32.totalorder %s23_s22, %s1631_s30  ;;  %p1637_p5 = scmp.lt.s32.totalorder %s1631_s30, %s1631_s30 }
   0xb   :  { %p1638_p6 = por %p1637_p5, %p1636_p4 }
   0xd   :  { %p1639_p7 = pnand %p1638_p6, %p1632_p3 }
   0xf   :  { %1642 = shalt.err (!%p1639_p7)
}
  0x10   :  { %s1670_s7 = smov 256   ;;  %s1671_s8 = smov 16  }
  0x11   :  { %28 = dma.hbm_to_vmem [thread:$0]  %s2226_s2, 4096, %s23_s22, [#allocation3], %s1670_s7, %s1670_s7, %s1671_s8  }
  0x12   :  { %s1672_s11 = smov [#allocation4]   ;;  %s1643_s15 = scalar_lea.hbm %s2228_s4, 1024 }
  0x13   :  { %s36_s12 = sshll.u32 %s1672_s11, 4  ;;  %p1644_p8 = scmp.ne.s32.totalorder %s2228_s4, %s1643_s15  ;;  %s37_s12 = int_to_ptr.vmem [resolvable:$true] %s36_s12 }
  0x14   :  { %p1647_p9 = scmp.lt.u32.totalorder %s1643_s15, %s2228_s4 }
  0x16   :  { %p1649_p10 = pnand %p1647_p9, %p1644_p8 }
  0x18   :  { %1652 = shalt.err (!%p1649_p10)
}
  0x19   :  { %s1653_s20 = scalar_lea.vmem %s37_s12, 1024  ;;  %p1658_p12 = scmp.lt.s32.totalorder %s37_s12, %s37_s12 }
  0x1a   :  { %p1654_p11 = scmp.ne.s32.totalorder %s37_s12, %s1653_s20  ;;  %p1659_p13 = scmp.lt.s32.totalorder %s1653_s20, %s1653_s20 }
  0x1c   :  { %p1660_p0 = por %p1659_p13, %p1658_p12 }
  0x1e   :  { %p1661_p1 = pnand %p1660_p0, %p1654_p11 }
  0x20   :  { %1664 = shalt.err (!%p1661_p1)
}
  0x21   :  { %s1673_s2 = smov 64   ;;  %s1674_s21 = smov 4  }
  0x22   :  { %42 = dma.hbm_to_vmem [thread:$0]  %s2228_s4, 1024, %s37_s12, [#allocation5], %s1673_s2, %s1673_s2, %s1674_s21  }
  0x23   :  { %1665 = dma.done.wait [#allocation3], 4096  }
  0x24   :  { %1666 = vsyncadd [#allocation3], 4294963200 }
  0x25   :  { %1667 = dma.done.wait [#allocation5], 1024  }
  0x26   :  { %1668 = vsyncadd [#allocation5], 4294966272  ;;  %v1675_v0 = vmov 0   ;;  %v57_v1 = vlaneseq  ;;  %v1676_v2 = vmov 1983009808   ;;  %v54_v14 = vld [vmem:[%s2225_s1] sm:$0xff] }
  0x27   :  { %144 = vmatprep.mubr.bf16.mxu0 %v1675_v0  ;;  %418 = vmatprep.mubr.bf16.mxu1 %v1675_v0  ;;  %v80_v3 = vunpack.c.l.s4 %v1676_v2  ;;  %v1738_v4 = vld [vmem:[#allocation2 + $0x4] ss:$16 sps:$4 sm:$0xff]   ;;  %v1740_v5 = vld [vmem:[#allocation2] ss:$16 sps:$4 sm:$0xff]   ;;  %vm99_vm0 = vcmask 1041408   ;;  %v78_v16 = vcombine.high %v54_v14, %v54_v14  ;;  %vm95_vm1 = vcmask 31744  }
  0x28   :  { %386 = vmatprep.subr.bf16.mxu1 %v1738_v4  ;;  %v1743_v6 = vld [vmem:[#allocation2 + $0x24] ss:$16 sps:$4 sm:$0xff]   ;;  %v1745_v7 = vshrl.u32 %v57_v1, 7  ;;  %v1748_v9 = vld [vmem:[#allocation2 + $0x20] ss:$16 sps:$4 sm:$0xff]  }
  0x29   :  { %v81_v8 = vunpack.c.0.s8 %v80_v3  ;;  %387 = vmatpush1.bf16.msra.mxu1 %v1740_v5  ;;  %v1751_v10 = vld [vmem:[#allocation2 + $0x44] ss:$16 sps:$4 sm:$0xff]   ;;  %v1755_v12 = vld [vmem:[#allocation2 + $0x40] ss:$16 sps:$4 sm:$0xff]   ;;  %v1803_v33 = vld [vmem:[#allocation2 + $0xc] ss:$16 sps:$4 sm:$0xff]  }
  0x2a   :  { %388 = vmatprep.subr.bf16.mxu1 %v1743_v6  ;;  %v1758_v13 = vld [vmem:[#allocation2 + $0x64] ss:$16 sps:$4 sm:$0xff]   ;;  %v1763_v15 = vld [vmem:[#allocation2 + $0x60] ss:$16 sps:$4 sm:$0xff]   ;;  %v1808_v34 = vld [vmem:[#allocation2 + $0x8] ss:$16 sps:$4 sm:$0xff]  }
  0x2b   :  { %v84_v11 = vsub.s32 %v81_v8, %v1745_v7  ;;  %v52_v18 = vld [vmem:[%s2224_s0] sm:$0xff]  ;;  %v1812_v35 = vld [vmem:[#allocation2 + $0x2c] ss:$16 sps:$4 sm:$0xff]   ;;  %v1817_v36 = vld [vmem:[#allocation2 + $0x28] ss:$16 sps:$4 sm:$0xff]   ;;  %v63_v61 = vsub.s32 1, %v1745_v7 }
  0x2c   :  { %v1770_v19 = vld [vmem:[#allocation2 + $0x84] ss:$16 sps:$4 sm:$0xff]   ;;  %v53_v23 = vpack.c.bf16 %v52_v18, %v52_v18  ;;  %v1775_v25 = vld [vmem:[#allocation2 + $0x80] ss:$16 sps:$4 sm:$0xff]   ;;  %v1821_v37 = vld [vmem:[#allocation2 + $0x4c] ss:$16 sps:$4 sm:$0xff]  }
  0x2d   :  { %389 = vmatpush1.bf16.msra.mxu1 %v1748_v9  ;;  %v85_v17 = vrot.slane %v54_v14, %v84_v11  ;;  %v92_v20 = vrot.slane %v78_v16, %v84_v11  ;;  %v1778_v26 = vld [vmem:[#allocation2 + $0xa4] ss:$16 sps:$4 sm:$0xff]   ;;  %v1784_v28 = vld [vmem:[#allocation2 + $0xa0] ss:$16 sps:$4 sm:$0xff]   ;;  %v1826_v38 = vld [vmem:[#allocation2 + $0x48] ss:$16 sps:$4 sm:$0xff]  }
  0x2e   :  { %390 = vmatprep.subr.bf16.mxu1 %v1751_v10  ;;  %v1787_v29 = vld [vmem:[#allocation2 + $0xc4] ss:$16 sps:$4 sm:$0xff]   ;;  %v1790_v30 = vld [vmem:[#allocation2 + $0xc0] ss:$16 sps:$4 sm:$0xff]   ;;  %v1829_v39 = vld [vmem:[#allocation2 + $0x6c] ss:$16 sps:$4 sm:$0xff]  }
  0x2f   :  { %v93_v21 = vcombine.high %v85_v17, %v85_v17  ;;  %v101_v22 = vsel %vm99_vm0, %v85_v17, 0  ;;  %v94_v24 = vcombine.high %v92_v20, %v92_v20  ;;  %v107_v27 = vsel %vm99_vm0, %v92_v20, 0  ;;  %v1793_v31 = vld [vmem:[#allocation2 + $0xe4] ss:$16 sps:$4 sm:$0xff]   ;;  %v1799_v32 = vld [vmem:[#allocation2 + $0xe0] ss:$16 sps:$4 sm:$0xff]  }
  0x30   :  { %v1834_v40 = vld [vmem:[#allocation2 + $0x68] ss:$16 sps:$4 sm:$0xff]   ;;  %v1837_v41 = vld [vmem:[#allocation2 + $0x8c] ss:$16 sps:$4 sm:$0xff]   ;;  %v55_v62 = vld [vmem:[%s2227_s3] sm:$0xf] }
  0x31   :  { %391 = vmatpush1.bf16.msra.mxu1 %v1755_v12  ;;  %1379 = vmatprep.subr.msk.bf16.mxu0 %vm99_vm0, %v93_v21  ;;  %v1842_v42 = vld [vmem:[#allocation2 + $0x88] ss:$16 sps:$4 sm:$0xff]   ;;  %v1845_v43 = vld [vmem:[#allocation2 + $0xac] ss:$16 sps:$4 sm:$0xff]   ;;  %v59_v63 = vsub.s32 0, %v1745_v7  ;;  %v64_v1 = vrot.slane %v55_v62, %v63_v61  ;;  %v67_v17 = vsub.s32 2, %v1745_v7 }
  0x32   :  { %392 = vmatprep.subr.bf16.mxu1 %v1758_v13  ;;  %113 = vmatpush1.bf16.msra.mxu0 %v101_v22  ;;  %v1850_v44 = vld [vmem:[#allocation2 + $0xa8] ss:$16 sps:$4 sm:$0xff]   ;;  %v1853_v45 = vld [vmem:[#allocation2 + $0xcc] ss:$16 sps:$4 sm:$0xff]   ;;  %v71_v18 = vsub.s32 3, %v1745_v7 }
  0x33   :  { %1381 = vmatprep.subr.msk.bf16.mxu0 %vm99_vm0, %v94_v24  ;;  %v1858_v46 = vld [vmem:[#allocation2 + $0xc8] ss:$16 sps:$4 sm:$0xff]   ;;  %v1861_v47 = vld [vmem:[#allocation2 + $0xec] ss:$16 sps:$4 sm:$0xff]   ;;  %v60_v2 = vrot.slane %v55_v62, %v59_v63  ;;  %v68_v21 = vrot.slane %v55_v62, %v67_v17 }
  0x34   :  { %v1866_v48 = vld [vmem:[#allocation2 + $0xe8] ss:$16 sps:$4 sm:$0xff]   ;;  %v72_v22 = vrot.slane %v55_v62, %v71_v18 }
  0x35   :  { %393 = vmatpush1.bf16.msra.mxu1 %v1763_v15  ;;  %1380 = vmatmul.mubr.msk.bf16.vlgmr.msra.gmra.mrb[0].mxu0 %vm95_vm1, %v53_v23 }
  0x36   :  { %394 = vmatprep.subr.bf16.mxu1 %v1770_v19  ;;  %154 = vmatpush1.bf16.msra.mxu0 %v107_v27 }
  0x37   :  { %185 = vmatprep.mubr.bf16.mxu0 %v1675_v0  ;;  %491 = vmatprep.subr.bf16.mxu0 %v1738_v4 }
  0x39   :  { %395 = vmatpush1.bf16.msra.mxu1 %v1775_v25 }
  0x3a   :  { %396 = vmatprep.subr.bf16.mxu1 %v1778_v26 }
  0x3d   :  { %397 = vmatpush1.bf16.msra.mxu1 %v1784_v28  ;;  %1382 = vmatmul.mubr.msk.bf16.vlgmr.msra.gmra.mrb[4].mxu0 %vm95_vm1, %v53_v23 }
  0x3e   :  { %398 = vmatprep.subr.bf16.mxu1 %v1787_v29  ;;  %492 = vmatpush1.bf16.msra.mxu0 %v1740_v5 }
  0x3f   :  { %493 = vmatprep.subr.bf16.mxu0 %v1743_v6  ;;  %523 = vmatprep.mubr.bf16.mxu0 %v1675_v0 }
  0x41   :  { %399 = vmatpush1.bf16.msra.mxu1 %v1790_v30 }
  0x42   :  { %400 = vmatprep.subr.bf16.mxu1 %v1793_v31  ;;  %494 = vmatpush1.bf16.msra.mxu0 %v1748_v9 }
  0x43   :  { %495 = vmatprep.subr.bf16.mxu0 %v1751_v10 }
  0x45   :  { %401 = vmatpush1.bf16.msra.mxu1 %v1799_v32 }
  0x46   :  { %427 = vmatprep.subr.bf16.mxu1 %v1803_v33  ;;  %496 = vmatpush1.bf16.msra.mxu0 %v1755_v12 }
  0x47   :  { %497 = vmatprep.subr.bf16.mxu0 %v1758_v13 }
  0x48   :  { %419 = vmatmul.mubr.bf16.vlgmr.msra.gmra.mrb[0].mxu1 %v1675_v0 }
  0x49   :  { %428 = vmatpush1.bf16.msra.mxu1 %v1808_v34  ;;  %459 = vmatprep.mubr.bf16.mxu1 %v1675_v0 }
  0x4a   :  { %429 = vmatprep.subr.bf16.mxu1 %v1812_v35  ;;  %498 = vmatpush1.bf16.msra.mxu0 %v1763_v15 }
  0x4b   :  { %499 = vmatprep.subr.bf16.mxu0 %v1770_v19 }
  0x4d   :  { %430 = vmatpush1.bf16.msra.mxu1 %v1817_v36 }
  0x4e   :  { %431 = vmatprep.subr.bf16.mxu1 %v1821_v37  ;;  %500 = vmatpush1.bf16.msra.mxu0 %v1775_v25 }
  0x4f   :  { %501 = vmatprep.subr.bf16.mxu0 %v1778_v26 }
  0x51   :  { %432 = vmatpush1.bf16.msra.mxu1 %v1826_v38 }
  0x52   :  { %433 = vmatprep.subr.bf16.mxu1 %v1829_v39  ;;  %502 = vmatpush1.bf16.msra.mxu0 %v1784_v28 }
  0x53   :  { %503 = vmatprep.subr.bf16.mxu0 %v1787_v29 }
  0x55   :  { %434 = vmatpush1.bf16.msra.mxu1 %v1834_v40 }
  0x56   :  { %435 = vmatprep.subr.bf16.mxu1 %v1837_v41  ;;  %504 = vmatpush1.bf16.msra.mxu0 %v1790_v30 }
  0x57   :  { %505 = vmatprep.subr.bf16.mxu0 %v1793_v31 }
  0x59   :  { %436 = vmatpush1.bf16.msra.mxu1 %v1842_v42 }
  0x5a   :  { %437 = vmatprep.subr.bf16.mxu1 %v1845_v43  ;;  %506 = vmatpush1.bf16.msra.mxu0 %v1799_v32 }
  0x5b   :  { %596 = vmatprep.subr.bf16.mxu0 %v1738_v4 }
  0x5d   :  { %438 = vmatpush1.bf16.msra.mxu1 %v1850_v44 }
  0x5e   :  { %439 = vmatprep.subr.bf16.mxu1 %v1853_v45 }
  0x61   :  { %440 = vmatpush1.bf16.msra.mxu1 %v1858_v46 }
  0x62   :  { %441 = vmatprep.subr.bf16.mxu1 %v1861_v47 }
  0x65   :  { %442 = vmatpush1.bf16.msra.mxu1 %v1866_v48 }
  0x66   :  { %532 = vmatprep.subr.bf16.mxu1 %v1803_v33 }
  0x68   :  { %460 = vmatmul.mubr.bf16.vlgmr.msra.gmra.mrb[4].mxu1 %v1675_v0 }
  0x69   :  { %533 = vmatpush1.bf16.msra.mxu1 %v1808_v34  ;;  %564 = vmatprep.mubr.bf16.mxu1 %v1675_v0 }
  0x6a   :  { %534 = vmatprep.subr.bf16.mxu1 %v1812_v35 }
  0x6d   :  { %535 = vmatpush1.bf16.msra.mxu1 %v1817_v36 }
  0x6e   :  { %536 = vmatprep.subr.bf16.mxu1 %v1821_v37 }
  0x71   :  { %537 = vmatpush1.bf16.msra.mxu1 %v1826_v38 }
  0x72   :  { %538 = vmatprep.subr.bf16.mxu1 %v1829_v39 }
  0x75   :  { %539 = vmatpush1.bf16.msra.mxu1 %v1834_v40 }
  0x76   :  { %540 = vmatprep.subr.bf16.mxu1 %v1837_v41 }
  0x79   :  { %541 = vmatpush1.bf16.msra.mxu1 %v1842_v42 }
  0x7a   :  { %542 = vmatprep.subr.bf16.mxu1 %v1845_v43 }
  0x7d   :  { %543 = vmatpush1.bf16.msra.mxu1 %v1850_v44 }
  0x7e   :  { %544 = vmatprep.subr.bf16.mxu1 %v1853_v45 }
  0x81   :  { %545 = vmatpush1.bf16.msra.mxu1 %v1858_v46 }
  0x82   :  { %546 = vmatprep.subr.bf16.mxu1 %v1861_v47 }
  0x85   :  { %547 = vmatpush1.bf16.msra.mxu1 %v1866_v48 }
  0x86   :  { %637 = vmatprep.subr.bf16.mxu1 %v1803_v33 }
 0x108   :  { %v146_v49 = vpop.f32.mrb[0].mxu0 }
 0x109   :  { %v148_v50 = vpop.f32.mrb[1].mxu0  ;;  %v1896_v8 = vadd.f32 %v146_v49, %v60_v2 }
 0x10a   :  { %v150_v51 = vpop.f32.mrb[2].mxu0  ;;  %v1894_v3 = vadd.f32 %v148_v50, %v64_v1 }
 0x10b   :  { %v151_v52 = vpop.f32.mrb[3].mxu0 }
 0x110   :  { %v187_v53 = vpop.f32.mrb[4].mxu0 }
 0x111   :  { %v189_v54 = vpop.f32.mrb[5].mxu0  ;;  %v1902_v23 = vadd.f32 %v187_v53, %v68_v21 }
 0x112   :  { %v191_v55 = vpop.f32.mrb[6].mxu0  ;;  %v1904_v24 = vadd.f32 %v189_v54, %v72_v22 }
 0x113   :  { %v192_v56 = vpop.f32.mrb[7].mxu0 }
 0x11b   :  { %v420_v57 = vpop.f32.mrb[0].mxu1 }
 0x11c   :  { %v422_v58 = vpop.f32.mrb[1].mxu1  ;;  %v468_v14 = vadd.f32 %v420_v57, %v1896_v8 }
 0x11d   :  { %v424_v59 = vpop.f32.mrb[2].mxu1  ;;  %v469_v11 = vadd.f32 %v422_v58, %v1894_v3 }
 0x11e   :  { %v425_v60 = vpop.f32.mrb[3].mxu1  ;;  %v472_v20 = vmul.f32 0.5, %v468_v14 }
 0x11f   :  { %v476_v16 = vmul.f32 0.5, %v469_v11 }
 0x121   :  { %1525 = vtanh.f32 %v476_v16 }
 0x122   :  { %1527 = vtanh.f32 %v472_v20 }
 0x12b   :  { %v1526_v55 = vpop.eup %1525 }
 0x12c   :  { %v1528_v7 = vpop.eup %1527  ;;  %v478_v57 = vadd.f32 1.0, %v1526_v55 }
 0x12d   :  { %v474_v59 = vadd.f32 1.0, %v1528_v7 }
 0x12e   :  { %v479_v60 = vmul.f32 0.5, %v478_v57 }
 0x12f   :  { %v475_v53 = vmul.f32 0.5, %v474_v59 }
 0x130   :  { %v485_v54 = vmul.f32 0.0, %v479_v60 }
 0x13b   :  { %v461_v27 = vpop.f32.mrb[4].mxu1 }
 0x13c   :  { %v470_v49 = vadd.f32 %v461_v27, %v1902_v23  ;;  %v463_v50 = vpop.f32.mrb[5].mxu1 }
 0x13d   :  { %v471_v51 = vadd.f32 %v463_v50, %v1904_v24  ;;  %v465_v52 = vpop.f32.mrb[6].mxu1 }
 0x13e   :  { %1529 = vtanh.f32 %v470_v49  ;;  %v466_v56 = vpop.f32.mrb[7].mxu1 }
 0x13f   :  { %v481_v58 = vmul.f32 0.5, %v471_v51 }
 0x141   :  { %1531 = vtanh.f32 %v481_v58 }
 0x148   :  { %v1530_v61 = vpop.eup %1529 }
 0x149   :  { %v486_v62 = vmul.f32 %v1530_v61, %v475_v53 }
 0x14b   :  { %v1908_v63 = vadd.f32 %v486_v62, %v485_v54  ;;  %v1532_v1 = vpop.eup %1531 }
 0x14c   :  { %v483_v2 = vadd.f32 1.0, %v1532_v1 }
 0x14d   :  { %1533 = vtanh.f32 %v1908_v63 }
 0x14e   :  { %v484_v11 = vmul.f32 0.5, %v483_v2 }
 0x157   :  { %v1534_v14 = vpop.eup %1533 }
 0x158   :  { %v1911_v16 = vmul.f32 %v1534_v14, %v484_v11 }
 0x15a   :  { %v490_v17 = vpack.c.bf16 %v1911_v16, %v1911_v16 }
 0x15c   :  { %524 = vmatmul.mubr.bf16.vlgmr.msra.gmra.mrb[8].mxu0 %v490_v17  ;;  %565 = vmatmul.mubr.bf16.vlgmr.msra.gmra.mrb[8].mxu1 %v490_v17 }
 0x15d   :  { %597 = vmatpush1.bf16.msra.mxu0 %v1740_v5  ;;  %638 = vmatpush1.bf16.msra.mxu1 %v1808_v34 }
 0x15e   :  { %598 = vmatprep.subr.bf16.mxu0 %v1743_v6  ;;  %639 = vmatprep.subr.bf16.mxu1 %v1812_v35 }
 0x15f   :  { %628 = vmatprep.mubr.bf16.mxu0 %v1675_v0  ;;  %669 = vmatprep.mubr.bf16.mxu1 %v1675_v0 }
 0x161   :  { %599 = vmatpush1.bf16.msra.mxu0 %v1748_v9  ;;  %640 = vmatpush1.bf16.msra.mxu1 %v1817_v36 }
 0x162   :  { %600 = vmatprep.subr.bf16.mxu0 %v1751_v10  ;;  %641 = vmatprep.subr.bf16.mxu1 %v1821_v37 }
 0x165   :  { %601 = vmatpush1.bf16.msra.mxu0 %v1755_v12  ;;  %642 = vmatpush1.bf16.msra.mxu1 %v1826_v38 }
 0x166   :  { %602 = vmatprep.subr.bf16.mxu0 %v1758_v13  ;;  %643 = vmatprep.subr.bf16.mxu1 %v1829_v39 }
 0x169   :  { %603 = vmatpush1.bf16.msra.mxu0 %v1763_v15  ;;  %644 = vmatpush1.bf16.msra.mxu1 %v1834_v40 }
 0x16a   :  { %604 = vmatprep.subr.bf16.mxu0 %v1770_v19  ;;  %645 = vmatprep.subr.bf16.mxu1 %v1837_v41 }
 0x16d   :  { %605 = vmatpush1.bf16.msra.mxu0 %v1775_v25  ;;  %646 = vmatpush1.bf16.msra.mxu1 %v1842_v42 }
 0x16e   :  { %606 = vmatprep.subr.bf16.mxu0 %v1778_v26  ;;  %647 = vmatprep.subr.bf16.mxu1 %v1845_v43 }
 0x171   :  { %607 = vmatpush1.bf16.msra.mxu0 %v1784_v28  ;;  %648 = vmatpush1.bf16.msra.mxu1 %v1850_v44 }
 0x172   :  { %608 = vmatprep.subr.bf16.mxu0 %v1787_v29  ;;  %649 = vmatprep.subr.bf16.mxu1 %v1853_v45 }
 0x175   :  { %609 = vmatpush1.bf16.msra.mxu0 %v1790_v30  ;;  %650 = vmatpush1.bf16.msra.mxu1 %v1858_v46 }
 0x176   :  { %610 = vmatprep.subr.bf16.mxu0 %v1793_v31  ;;  %651 = vmatprep.subr.bf16.mxu1 %v1861_v47 }
 0x179   :  { %611 = vmatpush1.bf16.msra.mxu0 %v1799_v32  ;;  %652 = vmatpush1.bf16.msra.mxu1 %v1866_v48 }
 0x17a   :  { %701 = vmatprep.subr.bf16.mxu0 %v1738_v4  ;;  %742 = vmatprep.subr.bf16.mxu1 %v1803_v33 }
 0x22f   :  { %v525_v18 = vpop.f32.mrb[8].mxu0  ;;  %v566_v20 = vpop.f32.mrb[8].mxu1 }
 0x230   :  { %v573_v21 = vadd.f32 %v525_v18, %v1896_v8  ;;  %v527_v22 = vpop.f32.mrb[9].mxu0  ;;  %v568_v27 = vpop.f32.mrb[9].mxu1  ;;  %v575_v57 = vadd.f32 %v566_v20, %v1902_v23 }
 0x231   :  { %v574_v49 = vadd.f32 %v527_v22, %v1894_v3  ;;  %v529_v50 = vpop.f32.mrb[10].mxu0  ;;  %v570_v51 = vpop.f32.mrb[10].mxu1  ;;  %v576_v58 = vadd.f32 %v568_v27, %v1904_v24 }
 0x232   :  { %v577_v52 = vmul.f32 0.5, %v573_v21  ;;  %v530_v55 = vpop.f32.mrb[11].mxu0  ;;  %v571_v56 = vpop.f32.mrb[11].mxu1 }
 0x233   :  { %v581_v7 = vmul.f32 0.5, %v574_v49  ;;  %v586_v59 = vmul.f32 0.5, %v576_v58 }
 0x234   :  { %1535 = vtanh.f32 %v577_v52 }
 0x235   :  { %1537 = vtanh.f32 %v581_v7 }
 0x236   :  { %1539 = vtanh.f32 %v575_v57 }
 0x237   :  { %1541 = vtanh.f32 %v586_v59 }
 0x23e   :  { %v1536_v60 = vpop.eup %1535 }
 0x23f   :  { %v1538_v53 = vpop.eup %1537  ;;  %v579_v61 = vadd.f32 1.0, %v1536_v60 }
 0x240   :  { %v583_v54 = vadd.f32 1.0, %v1538_v53  ;;  %v1540_v1 = vpop.eup %1539 }
 0x241   :  { %v580_v62 = vmul.f32 0.5, %v579_v61  ;;  %v1542_v18 = vpop.eup %1541 }
 0x242   :  { %v584_v2 = vmul.f32 0.5, %v583_v54  ;;  %v588_v20 = vadd.f32 1.0, %v1542_v18 }
 0x243   :  { %v591_v11 = vmul.f32 %v1540_v1, %v580_v62 }
 0x244   :  { %v590_v14 = vmul.f32 %v584_v2, %v1908_v63  ;;  %v589_v21 = vmul.f32 0.5, %v588_v20 }
 0x246   :  { %v1954_v17 = vadd.f32 %v591_v11, %v590_v14 }
 0x248   :  { %1543 = vtanh.f32 %v1954_v17 }
 0x252   :  { %v1544_v22 = vpop.eup %1543 }
 0x253   :  { %v1957_v27 = vmul.f32 %v1544_v22, %v589_v21 }
 0x255   :  { %v595_v49 = vpack.c.bf16 %v1957_v27, %v1957_v27 }
 0x257   :  { %629 = vmatmul.mubr.bf16.vlgmr.msra.gmra.mrb[12].mxu0 %v595_v49  ;;  %670 = vmatmul.mubr.bf16.vlgmr.msra.gmra.mrb[12].mxu1 %v595_v49 }
 0x258   :  { %702 = vmatpush1.bf16.msra.mxu0 %v1740_v5  ;;  %743 = vmatpush1.bf16.msra.mxu1 %v1808_v34 }
 0x259   :  { %703 = vmatprep.subr.bf16.mxu0 %v1743_v6  ;;  %744 = vmatprep.subr.bf16.mxu1 %v1812_v35 }
 0x25a   :  { %733 = vmatprep.mubr.bf16.mxu0 %v1675_v0  ;;  %774 = vmatprep.mubr.bf16.mxu1 %v1675_v0 }
 0x25c   :  { %704 = vmatpush1.bf16.msra.mxu0 %v1748_v9  ;;  %745 = vmatpush1.bf16.msra.mxu1 %v1817_v36 }
 0x25d   :  { %705 = vmatprep.subr.bf16.mxu0 %v1751_v10  ;;  %746 = vmatprep.subr.bf16.mxu1 %v1821_v37 }
 0x260   :  { %706 = vmatpush1.bf16.msra.mxu0 %v1755_v12  ;;  %747 = vmatpush1.bf16.msra.mxu1 %v1826_v38 }
 0x261   :  { %707 = vmatprep.subr.bf16.mxu0 %v1758_v13  ;;  %748 = vmatprep.subr.bf16.mxu1 %v1829_v39 }
 0x264   :  { %708 = vmatpush1.bf16.msra.mxu0 %v1763_v15  ;;  %749 = vmatpush1.bf16.msra.mxu1 %v1834_v40 }
 0x265   :  { %709 = vmatprep.subr.bf16.mxu0 %v1770_v19  ;;  %750 = vmatprep.subr.bf16.mxu1 %v1837_v41 }
 0x268   :  { %710 = vmatpush1.bf16.msra.mxu0 %v1775_v25  ;;  %751 = vmatpush1.bf16.msra.mxu1 %v1842_v42 }
 0x269   :  { %711 = vmatprep.subr.bf16.mxu0 %v1778_v26  ;;  %752 = vmatprep.subr.bf16.mxu1 %v1845_v43 }
 0x26c   :  { %712 = vmatpush1.bf16.msra.mxu0 %v1784_v28  ;;  %753 = vmatpush1.bf16.msra.mxu1 %v1850_v44 }
 0x26d   :  { %713 = vmatprep.subr.bf16.mxu0 %v1787_v29  ;;  %754 = vmatprep.subr.bf16.mxu1 %v1853_v45 }
 0x270   :  { %714 = vmatpush1.bf16.msra.mxu0 %v1790_v30  ;;  %755 = vmatpush1.bf16.msra.mxu1 %v1858_v46 }
 0x271   :  { %715 = vmatprep.subr.bf16.mxu0 %v1793_v31  ;;  %756 = vmatprep.subr.bf16.mxu1 %v1861_v47 }
 0x274   :  { %716 = vmatpush1.bf16.msra.mxu0 %v1799_v32  ;;  %757 = vmatpush1.bf16.msra.mxu1 %v1866_v48 }
 0x275   :  { %806 = vmatprep.subr.bf16.mxu0 %v1738_v4  ;;  %847 = vmatprep.subr.bf16.mxu1 %v1803_v33 }
 0x32a   :  { %v630_v63 = vpop.f32.mrb[12].mxu0  ;;  %v671_v50 = vpop.f32.mrb[12].mxu1 }
 0x32b   :  { %v678_v51 = vadd.f32 %v630_v63, %v1896_v8  ;;  %v632_v52 = vpop.f32.mrb[13].mxu0  ;;  %v673_v55 = vpop.f32.mrb[13].mxu1  ;;  %v680_v61 = vadd.f32 %v671_v50, %v1902_v23 }
 0x32c   :  { %v679_v56 = vadd.f32 %v632_v52, %v1894_v3  ;;  %v634_v7 = vpop.f32.mrb[14].mxu0  ;;  %v675_v57 = vpop.f32.mrb[14].mxu1  ;;  %v681_v54 = vadd.f32 %v673_v55, %v1904_v24 }
 0x32d   :  { %v682_v58 = vmul.f32 0.5, %v678_v51  ;;  %v635_v59 = vpop.f32.mrb[15].mxu0  ;;  %v676_v60 = vpop.f32.mrb[15].mxu1 }
 0x32e   :  { %v686_v53 = vmul.f32 0.5, %v679_v56  ;;  %v691_v62 = vmul.f32 0.5, %v681_v54 }
 0x32f   :  { %1545 = vtanh.f32 %v682_v58 }
 0x330   :  { %1547 = vtanh.f32 %v686_v53 }
 0x331   :  { %1549 = vtanh.f32 %v680_v61 }
 0x332   :  { %1551 = vtanh.f32 %v691_v62 }
 0x339   :  { %v1546_v1 = vpop.eup %1545 }
 0x33a   :  { %v1548_v2 = vpop.eup %1547  ;;  %v684_v11 = vadd.f32 1.0, %v1546_v1 }
 0x33b   :  { %v688_v14 = vadd.f32 1.0, %v1548_v2  ;;  %v1550_v20 = vpop.eup %1549 }
 0x33c   :  { %v685_v18 = vmul.f32 0.5, %v684_v11  ;;  %v1552_v50 = vpop.eup %1551 }
 0x33d   :  { %v689_v21 = vmul.f32 0.5, %v688_v14  ;;  %v693_v51 = vadd.f32 1.0, %v1552_v50 }
 0x33e   :  { %v696_v22 = vmul.f32 %v1550_v20, %v685_v18 }
 0x33f   :  { %v695_v49 = vmul.f32 %v689_v21, %v1954_v17  ;;  %v694_v52 = vmul.f32 0.5, %v693_v51 }
 0x341   :  { %v2000_v63 = vadd.f32 %v696_v22, %v695_v49 }
 0x343   :  { %1553 = vtanh.f32 %v2000_v63 }
 0x34d   :  { %v1554_v55 = vpop.eup %1553 }
 0x34e   :  { %v2003_v56 = vmul.f32 %v1554_v55, %v694_v52 }
 0x350   :  { %v700_v7 = vpack.c.bf16 %v2003_v56, %v2003_v56 }
 0x352   :  { %734 = vmatmul.mubr.bf16.vlgmr.msra.gmra.mrb[16].mxu0 %v700_v7  ;;  %775 = vmatmul.mubr.bf16.vlgmr.msra.gmra.mrb[16].mxu1 %v700_v7 }
 0x353   :  { %807 = vmatpush1.bf16.msra.mxu0 %v1740_v5  ;;  %848 = vmatpush1.bf16.msra.mxu1 %v1808_v34 }
 0x354   :  { %808 = vmatprep.subr.bf16.mxu0 %v1743_v6  ;;  %849 = vmatprep.subr.bf16.mxu1 %v1812_v35 }
 0x355   :  { %838 = vmatprep.mubr.bf16.mxu0 %v1675_v0  ;;  %879 = vmatprep.mubr.bf16.mxu1 %v1675_v0 }
 0x357   :  { %809 = vmatpush1.bf16.msra.mxu0 %v1748_v9  ;;  %850 = vmatpush1.bf16.msra.mxu1 %v1817_v36 }
 0x358   :  { %810 = vmatprep.subr.bf16.mxu0 %v1751_v10  ;;  %851 = vmatprep.subr.bf16.mxu1 %v1821_v37 }
 0x35b   :  { %811 = vmatpush1.bf16.msra.mxu0 %v1755_v12  ;;  %852 = vmatpush1.bf16.msra.mxu1 %v1826_v38 }
 0x35c   :  { %812 = vmatprep.subr.bf16.mxu0 %v1758_v13  ;;  %853 = vmatprep.subr.bf16.mxu1 %v1829_v39 }
 0x35f   :  { %813 = vmatpush1.bf16.msra.mxu0 %v1763_v15  ;;  %854 = vmatpush1.bf16.msra.mxu1 %v1834_v40 }
 0x360   :  { %814 = vmatprep.subr.bf16.mxu0 %v1770_v19  ;;  %855 = vmatprep.subr.bf16.mxu1 %v1837_v41 }
 0x363   :  { %815 = vmatpush1.bf16.msra.mxu0 %v1775_v25  ;;  %856 = vmatpush1.bf16.msra.mxu1 %v1842_v42 }
 0x364   :  { %816 = vmatprep.subr.bf16.mxu0 %v1778_v26  ;;  %857 = vmatprep.subr.bf16.mxu1 %v1845_v43 }
 0x367   :  { %817 = vmatpush1.bf16.msra.mxu0 %v1784_v28  ;;  %858 = vmatpush1.bf16.msra.mxu1 %v1850_v44 }
 0x368   :  { %818 = vmatprep.subr.bf16.mxu0 %v1787_v29  ;;  %859 = vmatprep.subr.bf16.mxu1 %v1853_v45 }
 0x36b   :  { %819 = vmatpush1.bf16.msra.mxu0 %v1790_v30  ;;  %860 = vmatpush1.bf16.msra.mxu1 %v1858_v46 }
 0x36c   :  { %820 = vmatprep.subr.bf16.mxu0 %v1793_v31  ;;  %861 = vmatprep.subr.bf16.mxu1 %v1861_v47 }
 0x36f   :  { %821 = vmatpush1.bf16.msra.mxu0 %v1799_v32  ;;  %862 = vmatpush1.bf16.msra.mxu1 %v1866_v48 }
 0x370   :  { %911 = vmatprep.subr.bf16.mxu0 %v1738_v4  ;;  %952 = vmatprep.subr.bf16.mxu1 %v1803_v33 }
 0x425   :  { %v735_v17 = vpop.f32.mrb[16].mxu0  ;;  %v776_v57 = vpop.f32.mrb[16].mxu1 }
 0x426   :  { %v783_v58 = vadd.f32 %v735_v17, %v1896_v8  ;;  %v737_v59 = vpop.f32.mrb[17].mxu0  ;;  %v778_v60 = vpop.f32.mrb[17].mxu1  ;;  %v785_v14 = vadd.f32 %v776_v57, %v1902_v23 }
 0x427   :  { %v784_v53 = vadd.f32 %v737_v59, %v1894_v3  ;;  %v739_v61 = vpop.f32.mrb[18].mxu0  ;;  %v780_v54 = vpop.f32.mrb[18].mxu1  ;;  %v786_v18 = vadd.f32 %v778_v60, %v1904_v24 }
 0x428   :  { %v787_v62 = vmul.f32 0.5, %v783_v58  ;;  %v740_v1 = vpop.f32.mrb[19].mxu0  ;;  %v781_v2 = vpop.f32.mrb[19].mxu1 }
 0x429   :  { %v791_v11 = vmul.f32 0.5, %v784_v53  ;;  %v796_v20 = vmul.f32 0.5, %v786_v18 }
 0x42a   :  { %1555 = vtanh.f32 %v787_v62 }
 0x42b   :  { %1557 = vtanh.f32 %v791_v11 }
 0x42c   :  { %1559 = vtanh.f32 %v785_v14 }
 0x42d   :  { %1561 = vtanh.f32 %v796_v20 }
 0x434   :  { %v1556_v21 = vpop.eup %1555 }
 0x435   :  { %v1558_v22 = vpop.eup %1557  ;;  %v789_v49 = vadd.f32 1.0, %v1556_v21 }
 0x436   :  { %v793_v50 = vadd.f32 1.0, %v1558_v22  ;;  %v1560_v52 = vpop.eup %1559 }
 0x437   :  { %v790_v51 = vmul.f32 0.5, %v789_v49  ;;  %v1562_v57 = vpop.eup %1561 }
 0x438   :  { %v794_v55 = vmul.f32 0.5, %v793_v50  ;;  %v798_v59 = vadd.f32 1.0, %v1562_v57 }
 0x439   :  { %v801_v7 = vmul.f32 %v1560_v52, %v790_v51 }
 0x43a   :  { %v800_v17 = vmul.f32 %v794_v55, %v2000_v63  ;;  %v799_v53 = vmul.f32 0.5, %v798_v59 }
 0x43c   :  { %v2046_v58 = vadd.f32 %v801_v7, %v800_v17 }
 0x43e   :  { %1563 = vtanh.f32 %v2046_v58 }
 0x448   :  { %v1564_v60 = vpop.eup %1563 }
 0x449   :  { %v2049_v61 = vmul.f32 %v1564_v60, %v799_v53 }
 0x44b   :  { %v805_v54 = vpack.c.bf16 %v2049_v61, %v2049_v61 }
 0x44d   :  { %839 = vmatmul.mubr.bf16.vlgmr.msra.gmra.mrb[20].mxu0 %v805_v54  ;;  %880 = vmatmul.mubr.bf16.vlgmr.msra.gmra.mrb[20].mxu1 %v805_v54 }
 0x44e   :  { %912 = vmatpush1.bf16.msra.mxu0 %v1740_v5  ;;  %953 = vmatpush1.bf16.msra.mxu1 %v1808_v34 }
 0x44f   :  { %913 = vmatprep.subr.bf16.mxu0 %v1743_v6  ;;  %954 = vmatprep.subr.bf16.mxu1 %v1812_v35 }
 0x450   :  { %943 = vmatprep.mubr.bf16.mxu0 %v1675_v0  ;;  %984 = vmatprep.mubr.bf16.mxu1 %v1675_v0 }
 0x452   :  { %914 = vmatpush1.bf16.msra.mxu0 %v1748_v9  ;;  %955 = vmatpush1.bf16.msra.mxu1 %v1817_v36 }
 0x453   :  { %915 = vmatprep.subr.bf16.mxu0 %v1751_v10  ;;  %956 = vmatprep.subr.bf16.mxu1 %v1821_v37 }
 0x456   :  { %916 = vmatpush1.bf16.msra.mxu0 %v1755_v12  ;;  %957 = vmatpush1.bf16.msra.mxu1 %v1826_v38 }
 0x457   :  { %917 = vmatprep.subr.bf16.mxu0 %v1758_v13  ;;  %958 = vmatprep.subr.bf16.mxu1 %v1829_v39 }
 0x45a   :  { %918 = vmatpush1.bf16.msra.mxu0 %v1763_v15  ;;  %959 = vmatpush1.bf16.msra.mxu1 %v1834_v40 }
 0x45b   :  { %919 = vmatprep.subr.bf16.mxu0 %v1770_v19  ;;  %960 = vmatprep.subr.bf16.mxu1 %v1837_v41 }
 0x45e   :  { %920 = vmatpush1.bf16.msra.mxu0 %v1775_v25  ;;  %961 = vmatpush1.bf16.msra.mxu1 %v1842_v42 }
 0x45f   :  { %921 = vmatprep.subr.bf16.mxu0 %v1778_v26  ;;  %962 = vmatprep.subr.bf16.mxu1 %v1845_v43 }
 0x462   :  { %922 = vmatpush1.bf16.msra.mxu0 %v1784_v28  ;;  %963 = vmatpush1.bf16.msra.mxu1 %v1850_v44 }
 0x463   :  { %923 = vmatprep.subr.bf16.mxu0 %v1787_v29  ;;  %964 = vmatprep.subr.bf16.mxu1 %v1853_v45 }
 0x466   :  { %924 = vmatpush1.bf16.msra.mxu0 %v1790_v30  ;;  %965 = vmatpush1.bf16.msra.mxu1 %v1858_v46 }
 0x467   :  { %925 = vmatprep.subr.bf16.mxu0 %v1793_v31  ;;  %966 = vmatprep.subr.bf16.mxu1 %v1861_v47 }
 0x46a   :  { %926 = vmatpush1.bf16.msra.mxu0 %v1799_v32  ;;  %967 = vmatpush1.bf16.msra.mxu1 %v1866_v48 }
 0x46b   :  { %1016 = vmatprep.subr.bf16.mxu0 %v1738_v4  ;;  %1057 = vmatprep.subr.bf16.mxu1 %v1803_v33 }
 0x520   :  { %v840_v5 = vpop.f32.mrb[20].mxu0  ;;  %v881_v6 = vpop.f32.mrb[20].mxu1 }
 0x521   :  { %v888_v9 = vadd.f32 %v840_v5, %v1896_v8  ;;  %v842_v10 = vpop.f32.mrb[21].mxu0  ;;  %v883_v63 = vpop.f32.mrb[21].mxu1  ;;  %v890_v21 = vadd.f32 %v881_v6, %v1902_v23 }
 0x522   :  { %v889_v62 = vadd.f32 %v842_v10, %v1894_v3  ;;  %v844_v1 = vpop.f32.mrb[22].mxu0  ;;  %v885_v2 = vpop.f32.mrb[22].mxu1  ;;  %v891_v4 = vadd.f32 %v883_v63, %v1904_v24  ;;  %v2099_v63 = vld [vmem:[#allocation2] ss:$16 sps:$4 sm:$0xff]  }
 0x523   :  { %v892_v11 = vmul.f32 0.5, %v888_v9  ;;  %v845_v14 = vpop.f32.mrb[23].mxu0  ;;  %v886_v18 = vpop.f32.mrb[23].mxu1  ;;  %v2113_v1 = vld [vmem:[#allocation2 + $0x44] ss:$16 sps:$4 sm:$0xff]  }
 0x524   :  { %v896_v20 = vmul.f32 0.5, %v889_v62  ;;  %v901_v22 = vmul.f32 0.5, %v891_v4  ;;  %v2109_v62 = vld [vmem:[#allocation2 + $0x20] ss:$16 sps:$4 sm:$0xff]  }
 0x525   :  { %1565 = vtanh.f32 %v892_v11 }
 0x526   :  { %1567 = vtanh.f32 %v896_v20 }
 0x527   :  { %1569 = vtanh.f32 %v890_v21 }
 0x528   :  { %1571 = vtanh.f32 %v901_v22 }
 0x52f   :  { %v1566_v49 = vpop.eup %1565 }
 0x530   :  { %v1568_v50 = vpop.eup %1567  ;;  %v894_v51 = vadd.f32 1.0, %v1566_v49 }
 0x531   :  { %v898_v52 = vadd.f32 1.0, %v1568_v50  ;;  %v1570_v7 = vpop.eup %1569 }
 0x532   :  { %v895_v55 = vmul.f32 0.5, %v894_v51  ;;  %v1572_v60 = vpop.eup %1571 }
 0x533   :  { %v899_v17 = vmul.f32 0.5, %v898_v52  ;;  %v903_v54 = vadd.f32 1.0, %v1572_v60 }
 0x534   :  { %v906_v57 = vmul.f32 %v1570_v7, %v895_v55 }
 0x535   :  { %v905_v59 = vmul.f32 %v899_v17, %v2046_v58  ;;  %v904_v5 = vmul.f32 0.5, %v903_v54  ;;  %v2103_v58 = vld [vmem:[#allocation2 + $0x24] ss:$16 sps:$4 sm:$0xff]  }
 0x537   :  { %v2092_v53 = vadd.f32 %v906_v57, %v905_v59 }
 0x539   :  { %1573 = vtanh.f32 %v2092_v53 }
 0x543   :  { %v1574_v6 = vpop.eup %1573 }
 0x544   :  { %v2095_v9 = vmul.f32 %v1574_v6, %v904_v5 }
 0x546   :  { %v910_v10 = vpack.c.bf16 %v2095_v9, %v2095_v9 }
 0x548   :  { %944 = vmatmul.mubr.bf16.vlgmr.msra.gmra.mrb[24].mxu0 %v910_v10  ;;  %985 = vmatmul.mubr.bf16.vlgmr.msra.gmra.mrb[24].mxu1 %v910_v10 }
 0x549   :  { %1017 = vmatpush1.bf16.msra.mxu0 %v2099_v63  ;;  %1058 = vmatpush1.bf16.msra.mxu1 %v1808_v34 }
 0x54a   :  { %1018 = vmatprep.subr.bf16.mxu0 %v2103_v58  ;;  %1059 = vmatprep.subr.bf16.mxu1 %v1812_v35 }
 0x54b   :  { %1048 = vmatprep.mubr.bf16.mxu0 %v1675_v0  ;;  %1089 = vmatprep.mubr.bf16.mxu1 %v1675_v0 }
 0x54d   :  { %1019 = vmatpush1.bf16.msra.mxu0 %v2109_v62  ;;  %1060 = vmatpush1.bf16.msra.mxu1 %v1817_v36 }
 0x54e   :  { %1020 = vmatprep.subr.bf16.mxu0 %v2113_v1  ;;  %1061 = vmatprep.subr.bf16.mxu1 %v1821_v37 }
 0x551   :  { %1021 = vmatpush1.bf16.msra.mxu0 %v1755_v12  ;;  %1062 = vmatpush1.bf16.msra.mxu1 %v1826_v38  ;;  %v1609_v12 = vld [vmem:[#allocation2 + $0x4] ss:$16 sps:$4 sm:$0xff]  }
 0x552   :  { %1022 = vmatprep.subr.bf16.mxu0 %v1758_v13  ;;  %1063 = vmatprep.subr.bf16.mxu1 %v1829_v39 }
 0x555   :  { %1023 = vmatpush1.bf16.msra.mxu0 %v1763_v15  ;;  %1064 = vmatpush1.bf16.msra.mxu1 %v1834_v40 }
 0x556   :  { %1024 = vmatprep.subr.bf16.mxu0 %v1770_v19  ;;  %1065 = vmatprep.subr.bf16.mxu1 %v1837_v41 }
 0x559   :  { %1025 = vmatpush1.bf16.msra.mxu0 %v1775_v25  ;;  %1066 = vmatpush1.bf16.msra.mxu1 %v1842_v42 }
 0x55a   :  { %1026 = vmatprep.subr.bf16.mxu0 %v1778_v26  ;;  %1067 = vmatprep.subr.bf16.mxu1 %v1845_v43 }
 0x55d   :  { %1027 = vmatpush1.bf16.msra.mxu0 %v1784_v28  ;;  %1068 = vmatpush1.bf16.msra.mxu1 %v1850_v44 }
 0x55e   :  { %1028 = vmatprep.subr.bf16.mxu0 %v1787_v29  ;;  %1069 = vmatprep.subr.bf16.mxu1 %v1853_v45 }
 0x561   :  { %1029 = vmatpush1.bf16.msra.mxu0 %v1790_v30  ;;  %1070 = vmatpush1.bf16.msra.mxu1 %v1858_v46 }
 0x562   :  { %1030 = vmatprep.subr.bf16.mxu0 %v1793_v31  ;;  %1071 = vmatprep.subr.bf16.mxu1 %v1861_v47 }
 0x565   :  { %1031 = vmatpush1.bf16.msra.mxu0 %v1799_v32  ;;  %1072 = vmatpush1.bf16.msra.mxu1 %v1866_v48 }
 0x566   :  { %1121 = vmatprep.subr.bf16.mxu0 %v1609_v12  ;;  %1162 = vmatprep.subr.bf16.mxu1 %v1803_v33 }
 0x61b   :  { %v945_v13 = vpop.f32.mrb[24].mxu0  ;;  %v986_v15 = vpop.f32.mrb[24].mxu1 }
 0x61c   :  { %v993_v19 = vadd.f32 %v945_v13, %v1896_v8  ;;  %v947_v25 = vpop.f32.mrb[25].mxu0  ;;  %v988_v26 = vpop.f32.mrb[25].mxu1  ;;  %v995_v14 = vadd.f32 %v986_v15, %v1902_v23 }
 0x61d   :  { %v994_v28 = vadd.f32 %v947_v25, %v1894_v3  ;;  %v949_v29 = vpop.f32.mrb[26].mxu0  ;;  %v990_v30 = vpop.f32.mrb[26].mxu1  ;;  %v996_v33 = vadd.f32 %v988_v26, %v1904_v24 }
 0x61e   :  { %v997_v31 = vmul.f32 0.5, %v993_v19  ;;  %v950_v2 = vpop.f32.mrb[27].mxu0  ;;  %v991_v11 = vpop.f32.mrb[27].mxu1 }
 0x61f   :  { %v1001_v32 = vmul.f32 0.5, %v994_v28  ;;  %v1006_v18 = vmul.f32 0.5, %v996_v33 }
 0x620   :  { %1575 = vtanh.f32 %v997_v31 }
 0x621   :  { %1577 = vtanh.f32 %v1001_v32 }
 0x622   :  { %1579 = vtanh.f32 %v995_v14 }
 0x623   :  { %1581 = vtanh.f32 %v1006_v18 }
 0x62a   :  { %v1576_v20 = vpop.eup %1575 }
 0x62b   :  { %v1578_v21 = vpop.eup %1577  ;;  %v999_v4 = vadd.f32 1.0, %v1576_v20 }
 0x62c   :  { %v1003_v22 = vadd.f32 1.0, %v1578_v21  ;;  %v1580_v50 = vpop.eup %1579 }
 0x62d   :  { %v1000_v49 = vmul.f32 0.5, %v999_v4  ;;  %v1582_v17 = vpop.eup %1581 }
 0x62e   :  { %v1004_v51 = vmul.f32 0.5, %v1003_v22  ;;  %v1008_v57 = vadd.f32 1.0, %v1582_v17  ;;  %v1523_v17 = vld [vmem:[#allocation4 + $0x30] sm:$0xff]  }
 0x62f   :  { %v1011_v52 = vmul.f32 %v1580_v50, %v1000_v49  ;;  %v1518_v49 = vld [vmem:[#allocation4 + $0x8] sm:$0xff]   ;;  %v1225_v50 = vpack.c.bf16 %v1957_v27, %v1911_v16  ;;  %v1524_v16 = vld [vmem:[#allocation4 + $0x38] sm:$0xff]   ;;  %v1226_v27 = vpack.c.bf16 %v2049_v61, %v2003_v56 }
 0x630   :  { %v1010_v55 = vmul.f32 %v1004_v51, %v2092_v53  ;;  %v1009_v59 = vmul.f32 0.5, %v1008_v57  ;;  %v1610_v53 = vld [vmem:[#allocation2 + $0x40] ss:$16 sps:$4 sm:$0xff]  }
 0x631   :  { %v1519_v51 = vld [vmem:[#allocation4 + $0x10] sm:$0xff]  }
 0x632   :  { %v2145_v7 = vadd.f32 %v1011_v52, %v1010_v55  ;;  %v1520_v52 = vld [vmem:[#allocation4 + $0x18] sm:$0xff]   ;;  %v1521_v55 = vld [vmem:[#allocation4 + $0x20] sm:$0xff]  }
 0x634   :  { %1583 = vtanh.f32 %v2145_v7 }
 0x63e   :  { %v1584_v60 = vpop.eup %1583 }
 0x63f   :  { %v2148_v54 = vmul.f32 %v1584_v60, %v1009_v59 }
 0x641   :  { %v1015_v5 = vpack.c.bf16 %v2148_v54, %v2148_v54  ;;  %v1227_v57 = vpack.c.bf16 %v2148_v54, %v2095_v9 }
 0x643   :  { %1049 = vmatmul.mubr.bf16.vlgmr.msra.gmra.mrb[28].mxu0 %v1015_v5  ;;  %1090 = vmatmul.mubr.bf16.vlgmr.msra.gmra.mrb[28].mxu1 %v1015_v5 }
 0x644   :  { %1122 = vmatpush1.bf16.msra.mxu0 %v2099_v63  ;;  %1163 = vmatpush1.bf16.msra.mxu1 %v1808_v34  ;;  %v1611_v34 = vld [vmem:[#allocation2 + $0x64] ss:$16 sps:$4 sm:$0xff]  }
 0x645   :  { %1123 = vmatprep.subr.bf16.mxu0 %v2103_v58  ;;  %1164 = vmatprep.subr.bf16.mxu1 %v1812_v35  ;;  %v1612_v35 = vld [vmem:[#allocation2 + $0x60] ss:$16 sps:$4 sm:$0xff]  }
 0x646   :  { %1153 = vmatprep.mubr.bf16.mxu0 %v1675_v0  ;;  %1194 = vmatprep.mubr.bf16.mxu1 %v1675_v0  ;;  %v1613_v0 = vld [vmem:[#allocation2 + $0x84] ss:$16 sps:$4 sm:$0xff]  }
 0x648   :  { %1124 = vmatpush1.bf16.msra.mxu0 %v2109_v62  ;;  %1165 = vmatpush1.bf16.msra.mxu1 %v1817_v36  ;;  %v1614_v36 = vld [vmem:[#allocation2 + $0x80] ss:$16 sps:$4 sm:$0xff]  }
 0x649   :  { %1125 = vmatprep.subr.bf16.mxu0 %v2113_v1  ;;  %1166 = vmatprep.subr.bf16.mxu1 %v1821_v37  ;;  %v1615_v37 = vld [vmem:[#allocation2 + $0xa4] ss:$16 sps:$4 sm:$0xff]  }
 0x64c   :  { %1126 = vmatpush1.bf16.msra.mxu0 %v1610_v53  ;;  %1167 = vmatpush1.bf16.msra.mxu1 %v1826_v38  ;;  %v1616_v38 = vld [vmem:[#allocation2 + $0xa0] ss:$16 sps:$4 sm:$0xff]  }
 0x64d   :  { %1127 = vmatprep.subr.bf16.mxu0 %v1611_v34  ;;  %1168 = vmatprep.subr.bf16.mxu1 %v1829_v39  ;;  %v1617_v39 = vld [vmem:[#allocation2 + $0xc4] ss:$16 sps:$4 sm:$0xff]  }
 0x650   :  { %1128 = vmatpush1.bf16.msra.mxu0 %v1612_v35  ;;  %1169 = vmatpush1.bf16.msra.mxu1 %v1834_v40  ;;  %v1618_v40 = vld [vmem:[#allocation2 + $0xc0] ss:$16 sps:$4 sm:$0xff]  }
 0x651   :  { %1129 = vmatprep.subr.bf16.mxu0 %v1613_v0  ;;  %1170 = vmatprep.subr.bf16.mxu1 %v1837_v41  ;;  %v1619_v41 = vld [vmem:[#allocation2 + $0xe4] ss:$16 sps:$4 sm:$0xff]  }
 0x654   :  { %1130 = vmatpush1.bf16.msra.mxu0 %v1614_v36  ;;  %1171 = vmatpush1.bf16.msra.mxu1 %v1842_v42  ;;  %v1620_v42 = vld [vmem:[#allocation2 + $0xe0] ss:$16 sps:$4 sm:$0xff]  }
 0x655   :  { %1131 = vmatprep.subr.bf16.mxu0 %v1615_v37  ;;  %1172 = vmatprep.subr.bf16.mxu1 %v1845_v43  ;;  %v1517_v43 = vld [vmem:[#allocation4] sm:$0xff]  }
 0x658   :  { %1132 = vmatpush1.bf16.msra.mxu0 %v1616_v38  ;;  %1173 = vmatpush1.bf16.msra.mxu1 %v1850_v44 }
 0x659   :  { %1133 = vmatprep.subr.bf16.mxu0 %v1617_v39  ;;  %1174 = vmatprep.subr.bf16.mxu1 %v1853_v45 }
 0x65c   :  { %1134 = vmatpush1.bf16.msra.mxu0 %v1618_v40  ;;  %1175 = vmatpush1.bf16.msra.mxu1 %v1858_v46 }
 0x65d   :  { %1135 = vmatprep.subr.bf16.mxu0 %v1619_v41  ;;  %1176 = vmatprep.subr.bf16.mxu1 %v1861_v47 }
 0x660   :  { %1136 = vmatpush1.bf16.msra.mxu0 %v1620_v42  ;;  %1177 = vmatpush1.bf16.msra.mxu1 %v1866_v48 }
 0x661   :  { %1436 = vmatprep.subr.bf16.mxu0 %v1517_v43 }
 0x716   :  { %v1050_v6 = vpop.f32.mrb[28].mxu0  ;;  %v1091_v44 = vpop.f32.mrb[28].mxu1 }
 0x717   :  { %v1098_v10 = vadd.f32 %v1050_v6, %v1896_v8  ;;  %v1052_v63 = vpop.f32.mrb[29].mxu0  ;;  %v1093_v45 = vpop.f32.mrb[29].mxu1  ;;  %v1100_v15 = vadd.f32 %v1091_v44, %v1902_v23 }
 0x718   :  { %v1099_v58 = vadd.f32 %v1052_v63, %v1894_v3  ;;  %v1054_v62 = vpop.f32.mrb[30].mxu0  ;;  %v1095_v46 = vpop.f32.mrb[30].mxu1  ;;  %v1101_v48 = vadd.f32 %v1093_v45, %v1904_v24 }
 0x719   :  { %v1102_v1 = vmul.f32 0.5, %v1098_v10  ;;  %v1055_v12 = vpop.f32.mrb[31].mxu0  ;;  %v1096_v13 = vpop.f32.mrb[31].mxu1 }
 0x71a   :  { %v1106_v47 = vmul.f32 0.5, %v1099_v58  ;;  %v1111_v19 = vmul.f32 0.5, %v1101_v48 }
 0x71b   :  { %1585 = vtanh.f32 %v1102_v1 }
 0x71c   :  { %1587 = vtanh.f32 %v1106_v47 }
 0x71d   :  { %1589 = vtanh.f32 %v1100_v15 }
 0x71e   :  { %1591 = vtanh.f32 %v1111_v19 }
 0x725   :  { %v1586_v25 = vpop.eup %1585 }
 0x726   :  { %v1588_v26 = vpop.eup %1587  ;;  %v1104_v28 = vadd.f32 1.0, %v1586_v25 }
 0x727   :  { %v1108_v29 = vadd.f32 1.0, %v1588_v26  ;;  %v1590_v31 = vpop.eup %1589 }
 0x728   :  { %v1105_v30 = vmul.f32 0.5, %v1104_v28  ;;  %v1592_v33 = vpop.eup %1591 }
 0x729   :  { %v1109_v2 = vmul.f32 0.5, %v1108_v29  ;;  %v1113_v18 = vadd.f32 1.0, %v1592_v33 }
 0x72a   :  { %v1116_v11 = vmul.f32 %v1590_v31, %v1105_v30 }
 0x72b   :  { %v1115_v32 = vmul.f32 %v1109_v2, %v2145_v7  ;;  %v1114_v20 = vmul.f32 0.5, %v1113_v18  ;;  %v1522_v7 = vld [vmem:[#allocation4 + $0x28] sm:$0xff]  }
 0x72d   :  { %v2178_v14 = vadd.f32 %v1116_v11, %v1115_v32 }
 0x72f   :  { %1593 = vtanh.f32 %v2178_v14 }
 0x739   :  { %v1594_v21 = vpop.eup %1593 }
 0x73a   :  { %v2181_v4 = vmul.f32 %v1594_v21, %v1114_v20 }
 0x73c   :  { %v1120_v22 = vpack.c.bf16 %v2181_v4, %v2181_v4 }
 0x73e   :  { %1154 = vmatmul.mubr.bf16.vlgmr.msra.gmra.mrb[32].mxu0 %v1120_v22  ;;  %1195 = vmatmul.mubr.bf16.vlgmr.msra.gmra.mrb[32].mxu1 %v1120_v22 }
 0x73f   :  { %1437 = vmatpush3.bf16.msra.mxu0 %v1517_v43  ;;  %1452 = vmatprep.mubr.bf16.mxu0 %v1225_v50 }
 0x740   :  { %1438 = vmatprep.subr.bf16.mxu0 %v1518_v49 }
 0x743   :  { %1439 = vmatpush3.bf16.msra.mxu0 %v1518_v49 }
 0x744   :  { %1440 = vmatprep.subr.bf16.mxu0 %v1519_v51 }
 0x747   :  { %1441 = vmatpush3.bf16.msra.mxu0 %v1519_v51 }
 0x748   :  { %1442 = vmatprep.subr.bf16.mxu0 %v1520_v52 }
 0x74b   :  { %1443 = vmatpush3.bf16.msra.mxu0 %v1520_v52 }
 0x74c   :  { %1444 = vmatprep.subr.bf16.mxu0 %v1521_v55 }
 0x74f   :  { %1445 = vmatpush3.bf16.msra.mxu0 %v1521_v55 }
 0x750   :  { %1446 = vmatprep.subr.bf16.mxu0 %v1522_v7 }
 0x753   :  { %1447 = vmatpush3.bf16.msra.mxu0 %v1522_v7 }
 0x754   :  { %1448 = vmatprep.subr.bf16.mxu0 %v1523_v17 }
 0x757   :  { %1449 = vmatpush3.bf16.msra.mxu0 %v1523_v17 }
 0x758   :  { %1450 = vmatprep.subr.bf16.mxu0 %v1524_v16 }
 0x75b   :  { %1451 = vmatpush3.bf16.msra.mxu0 %v1524_v16 }
 0x75e   :  { %1453 = vmatmul.mubr.bf16.vlgmr.msra.gmra.mrb[36].mxu0 %v1226_v27 }
 0x75f   :  { %1456 = vmatprep.mubr.bf16.mxu0 %v1227_v57 }
 0x811   :  { %v1155_v59 = vpop.f32.mrb[32].mxu0  ;;  %v1196_v60 = vpop.f32.mrb[32].mxu1 }
 0x812   :  { %v1203_v5 = vadd.f32 %v1155_v59, %v1896_v8  ;;  %v1157_v53 = vpop.f32.mrb[33].mxu0  ;;  %v1198_v34 = vpop.f32.mrb[33].mxu1  ;;  %v1205_v56 = vadd.f32 %v1196_v60, %v1902_v23 }
 0x813   :  { %v1204_v35 = vadd.f32 %v1157_v53, %v1894_v3  ;;  %v1159_v0 = vpop.f32.mrb[34].mxu0  ;;  %v1200_v36 = vpop.f32.mrb[34].mxu1  ;;  %v1206_v61 = vadd.f32 %v1198_v34, %v1904_v24  ;;  %v1415_v24 = vld [vmem:[%s2229_s5] ss:$0 sm:$0xff] }
 0x814   :  { %v1207_v37 = vmul.f32 0.5, %v1203_v5  ;;  %v1160_v38 = vpop.f32.mrb[35].mxu0  ;;  %v1201_v39 = vpop.f32.mrb[35].mxu1 }
 0x815   :  { %v1211_v40 = vmul.f32 0.5, %v1204_v35  ;;  %v1216_v9 = vmul.f32 0.5, %v1206_v61 }
 0x816   :  { %1595 = vtanh.f32 %v1207_v37 }
 0x817   :  { %1597 = vtanh.f32 %v1211_v40 }
 0x818   :  { %1599 = vtanh.f32 %v1205_v56 }
 0x819   :  { %1601 = vtanh.f32 %v1216_v9 }
 0x820   :  { %v1596_v54 = vpop.eup %1595 }
 0x821   :  { %v1598_v8 = vpop.eup %1597  ;;  %v1209_v41 = vadd.f32 1.0, %v1596_v54 }
 0x822   :  { %v1213_v42 = vadd.f32 1.0, %v1598_v8  ;;  %v1600_v43 = vpop.eup %1599 }
 0x823   :  { %v1210_v3 = vmul.f32 0.5, %v1209_v41  ;;  %v1602_v45 = vpop.eup %1601 }
 0x824   :  { %v1214_v6 = vmul.f32 0.5, %v1213_v42  ;;  %v1218_v23 = vadd.f32 1.0, %v1602_v45 }
 0x825   :  { %v1221_v44 = vmul.f32 %v1600_v43, %v1210_v3 }
 0x826   :  { %v1220_v10 = vmul.f32 %v1214_v6, %v2178_v14  ;;  %v1219_v1 = vmul.f32 0.5, %v1218_v23 }
 0x828   :  { %v1222_v63 = vadd.f32 %v1221_v44, %v1220_v10 }
 0x82a   :  { %1603 = vtanh.f32 %v1222_v63 }
 0x831   :  { %v1454_v58 = vpop.f32.mrb[36].mxu0 }
 0x832   :  { %v1343_v62 = vadd.f32 %v1454_v58, %v1415_v24  ;;  %v1334_v46 = vpop.f32.mrb[37].mxu0 }
 0x833   :  { %v1335_v12 = vadd.f32 %v1415_v24, %v1334_v46  ;;  %v1455_v13 = vpop.f32.mrb[38].mxu0 }
 0x834   :  { %v1604_v47 = vpop.eup %1603  ;;  %1367 = vst [vmem:[%s2230_s6 + $0x10] sm:$0xff] %v1343_v62  ;;  %v1346_v15 = vadd.f32 %v1455_v13, %v1415_v24  ;;  %v1337_v48 = vpop.f32.mrb[39].mxu0 }
 0x835   :  { %1365 = vst [vmem:[%s2230_s6] sm:$0xff] %v1335_v12  ;;  %v1338_v19 = vadd.f32 %v1415_v24, %v1337_v48  ;;  %v1224_v25 = vmul.f32 %v1604_v47, %v1219_v1 }
 0x836   :  { %1368 = vst [vmem:[%s2230_s6 + $0x18] sm:$0xff] %v1346_v15 }
 0x837   :  { %1366 = vst [vmem:[%s2230_s6 + $0x8] sm:$0xff] %v1338_v19  ;;  %v1228_v26 = vpack.c.bf16 %v1224_v25, %v2181_v4 }
 0x839   :  { %1457 = vmatmul.mubr.bf16.gmra.mrb[40].mxu0 %v1228_v26 }
 0x90c   :  { %v1458_v28 = vpop.f32.mrb[40].mxu0 }
 0x90d   :  { %v1359_v29 = vadd.f32 %v1458_v28, %v1415_v24  ;;  %v1350_v30 = vpop.f32.mrb[41].mxu0 }
 0x90e   :  { %v1351_v31 = vadd.f32 %v1415_v24, %v1350_v30  ;;  %v1459_v2 = vpop.f32.mrb[42].mxu0 }
 0x90f   :  { %1371 = vst [vmem:[%s2230_s6 + $0x30] sm:$0xff] %v1359_v29  ;;  %v1362_v11 = vadd.f32 %v1459_v2, %v1415_v24  ;;  %v1353_v32 = vpop.f32.mrb[43].mxu0 }
 0x910   :  { %1369 = vst [vmem:[%s2230_s6 + $0x20] sm:$0xff] %v1351_v31  ;;  %v1354_v14 = vadd.f32 %v1415_v24, %v1353_v32 }
 0x911   :  { %1372 = vst [vmem:[%s2230_s6 + $0x38] sm:$0xff] %v1362_v11 }
 0x912   :  { %1370 = vst [vmem:[%s2230_s6 + $0x28] sm:$0xff] %v1354_v14 }
 0x913   :  { %1377 = vsyncpa [#allocation3], 1 }
 0x914   :  { %1378 = vsyncpa [#allocation5], 1 }

</bundles_post_ra>
